<compile_context>
chip_gen: v7x
topology: tpu7x:2x2x1
jax: 0.10.0
libtpu: 0.0.40
codegen_flags: <defaults>
</compile_context>

<pallas_src>
import math

import jax
import jax.numpy as jnp
from jax import lax
from jax.experimental import pallas as pl
from jax.experimental.pallas import tpu as pltpu

CONV_HIDDEN = 8          # CH : hidden channels of the conv decoder feature map
MLP_HIDDEN = 64          # HID: hidden width of the per-pixel manifold MLP
POS_FREQS = (7, 17, 77)  # positional-embedding frequencies


def _pos_features(H, W):
    """Constant (H*W, P) positional features: raw xy in [-1,1] + sin/cos(freq*xy)."""
    ys = jnp.linspace(-1.0, 1.0, H)
    xs = jnp.linspace(-1.0, 1.0, W)
    gy, gx = jnp.meshgrid(ys, xs, indexing="ij")
    pos = jnp.stack([gy, gx], axis=-1).reshape(H * W, 2)
    feats = [pos]
    for f in POS_FREQS:
        feats.append(jnp.sin(f * pos))
        feats.append(jnp.cos(f * pos))
    return jnp.concatenate(feats, axis=-1).astype(jnp.float32)   # (H*W, 2 + 4*3)


def init_params(key, shape, code_size):
    """Deterministic synthetic parameters (shapes implied by the module __init__)."""
    C, H, W = shape
    K = code_size
    CH, HID = CONV_HIDDEN, MLP_HIDDEN
    P = 2 + 4 * len(POS_FREQS)

    def uniform(k, shp, fan_in):
        b = 1.0 / math.sqrt(fan_in)
        return jax.random.uniform(k, shp, jnp.float32, -b, b)

    ks = jax.random.split(key, 9)
    return dict(
        shape=(C, H, W),
        code_size=K,
        # DecoderConv2d: Linear(K -> H*W*CH)  (columns ordered (h, w, ch)) + 3x3 conv
        w_fc=uniform(ks[0], (K, H * W * CH), K),
        b_fc=uniform(ks[1], (1, H * W * CH), K),
        w_conv=uniform(ks[2], (9, CH, C), CH * 9),   # tap index = dy*3 + dx
        b_conv=uniform(ks[3], (1, C), CH * 9),
        # ImageManifoldDecoder: Linear(P+K -> HID) split into pos / code parts, Linear(HID -> C)
        w1_pos=uniform(ks[4], (P, HID), P + K),
        w1_code=uniform(ks[5], (K, HID), P + K),
        b1=uniform(ks[6], (1, HID), P + K),
        w2=uniform(ks[7], (HID, C), HID),
        b2=uniform(ks[8], (1, C), HID),
        pos_feat=_pos_features(H, W),                # (H*W, P) constant buffer
    )


def ensemble_decoder2d_forward(x, params, codes_per_step=None):
    """x: (N, code_size) float32 latent  ->  (N, C, H, W) float32 image."""
    C, H, W = params["shape"]
    K = params["code_size"]
    CH, HID = CONV_HIDDEN, MLP_HIDDEN
    HW = H * W
    N = x.shape[0]
    p = params

    # ---------- batching: B codes per grid step, batch on the lane axis ----------
    if codes_per_step is None:
        # >= 2 grid steps when N >= 2 (both v7x TCs), B capped to keep the
        # unrolled per-code fc loop and lane extent modest.
        B = max(1, min(8, pl.cdiv(N, 2)))
    else:
        B = codes_per_step
    if pl.cdiv(N, B) > 1 and (B * HW) % 128 != 0:
        B = N                                        # fall back to a single full-width step
    G = pl.cdiv(N, B)
    Np = G * B
    BHW = B * HW

    # ---------- batch-independent prep in plain JAX (once per call) ----------
    # fc weights rearranged so each per-code fc lands directly in (CH, HW):
    #   wfc2[ch*K + k, p] = w_fc[k, p*CH + ch]
    wfc2 = p["w_fc"].reshape(K, HW, CH).transpose(2, 0, 1).reshape(CH * K, HW)
    bfc = p["b_fc"].reshape(HW, CH).T                              # (CH, HW)
    # 0/1 helpers for the in-kernel block-diagonal lhs:
    #   rep replicates the code across the CH channel blocks (done on the MXU),
    #   bd keeps only the diagonal block for each output-channel row.
    j = jnp.arange(CH * K)
    rep = (j[None, :] % K == jnp.arange(K)[:, None]).astype(jnp.float32)   # (K, CH*K)
    bd = (j[None, :] // K == jnp.arange(CH)[:, None]).astype(jnp.float32)  # (CH, CH*K)

    w_conv_t = p["w_conv"].reshape(9 * CH, C).T                    # (C, 9*CH)
    b_conv_t = p["b_conv"].T                                       # (C, 1)

    # per-tap validity masks (row + column out-of-bounds combined), tiled over batch
    r = jnp.arange(HW, dtype=jnp.int32) // W
    c = jnp.arange(HW, dtype=jnp.int32) % W
    masks = []
    for t in range(9):
        dy, dx = t // 3, t % 3
        ok = ((r + dy - 1 >= 0) & (r + dy - 1 < H)
              & (c + dx - 1 >= 0) & (c + dx - 1 < W))
        masks.append(ok)
    mask9 = jnp.tile(jnp.stack(masks).astype(jnp.float32), (1, B))  # (9, B*HW)

    # hoisted positional half of the manifold MLP (identical for every code)
    pos_hid_t = (p["pos_feat"] @ p["w1_pos"] + p["b1"]).T          # (HID, HW)
    w1c_t = p["w1_code"].T                                         # (HID, K)
    w2_t = p["w2"].T                                               # (C, HID)
    b2_t = p["b2"].T                                               # (C, 1)

    codes = jnp.zeros((Np, K), jnp.float32).at[:N].set(x).reshape(G, B, K)

    def kernel(code_ref, rep_ref, bd_ref, wfc2_ref, bfc_ref,
               wconv_ref, bconv_ref, mask9_ref,
               poshid_ref, w1c_ref, w2_ref, b2_ref,
               out_ref, im2col_ref):
        code = code_ref[0]                                         # (B, K)

        # ---------- DecoderConv2d fc: block-diagonal matmuls -> (CH, B*HW) ----------
        code_rep = jnp.dot(code, rep_ref[...],
                           preferred_element_type=jnp.float32)     # (B, CH*K) replicated
        bd_m = bd_ref[...]
        wfc2_m = wfc2_ref[...]
        bfc_m = bfc_ref[...]
        feat_parts = []
        for b in range(B):
            L = code_rep[b:b + 1, :] * bd_m                        # (CH, CH*K) block-diag
            fb = jnp.dot(L, wfc2_m, preferred_element_type=jnp.float32) + bfc_m
            feat_parts.append(jnp.maximum(fb, 0.0))                # (CH, HW)
        feat = feat_parts[0] if B == 1 else jnp.concatenate(feat_parts, axis=1)

        # ---------- 3x3 conv: roll + mask taps, one im2col matmul ----------
        # tap (dy,dx) needs feat at pixel p + off; circular roll over B*HW is
        # corrected by mask9 which zeroes every row/col out-of-bounds position
        # (these are exactly the positions where the roll wrapped or crossed a
        # batch boundary).  Writes land at sublane-aligned offsets t*CH.
        for t in range(9):
            dy, dx = t // 3, t % 3
            off = (dy - 1) * W + (dx - 1)
            tap = feat if off == 0 else pltpu.roll(feat, shift=(-off) % BHW, axis=1)
            if t != 4:                                             # center tap mask is all-ones
                tap = tap * mask9_ref[t:t + 1, :]
            im2col_ref[t * CH:(t + 1) * CH, :] = tap
        y1 = (jnp.dot(wconv_ref[...], im2col_ref[...],
                      preferred_element_type=jnp.float32)
              + bconv_ref[...])                                    # (C, B*HW)

        # ---------- ImageManifoldDecoder: per-pixel MLP, code half on the MXU ----------
        code_hid = lax.dot_general(w1c_ref[...], code,
                                   (((1,), (1,)), ((), ())),
                                   preferred_element_type=jnp.float32)   # (HID, B)
        poshid = poshid_ref[...]                                         # (HID, HW)
        hid_parts = [jnp.maximum(poshid + code_hid[:, b:b + 1], 0.0)
                     for b in range(B)]
        hid = hid_parts[0] if B == 1 else jnp.concatenate(hid_parts, axis=1)
        y2 = (jnp.dot(w2_ref[...], hid,
                      preferred_element_type=jnp.float32)
              + b2_ref[...])                                       # (C, B*HW)

        # ---------- ensemble combine: sigmoid(conv) + manifold (lane-dense store) ----------
        out_ref[...] = pl.reciprocal(1.0 + jnp.exp(-y1), approx=True) + y2

    def full_spec(a):
        nd = a.ndim
        return pl.BlockSpec(a.shape, lambda i: (0,) * nd)

    weights = (rep, bd, wfc2, bfc, w_conv_t, b_conv_t, mask9,
               pos_hid_t, w1c_t, w2_t, b2_t)

    out_flat = pl.pallas_call(
        kernel,
        out_shape=jax.ShapeDtypeStruct((C, Np * HW), jnp.float32),
        grid_spec=pltpu.PrefetchScalarGridSpec(
            num_scalar_prefetch=0,
            grid=(G,),                                             # B codes per step
            in_specs=[pl.BlockSpec((1, B, K), lambda i: (i, 0, 0))]
                     + [full_spec(a) for a in weights],
            out_specs=pl.BlockSpec((C, BHW), lambda i: (0, i)),
            scratch_shapes=[pltpu.VMEM((9 * CH, BHW), jnp.float32)],   # im2col
        ),
        compiler_params=pltpu.CompilerParams(
            dimension_semantics=("parallel",),
            vmem_limit_bytes=32 * 1024 * 1024,
        ),
    )(codes, *weights)

    # (C, Np*H*W) -> (Np, C, H, W) -> first N images.
    return out_flat.reshape(C, Np, H, W).transpose(1, 0, 2, 3)[:N]


def ensemble_decoder2d_reference(x, params):
    """Pure-JAX reference mirroring the kernel semantics."""
    C, H, W = params["shape"]
    CH = CONV_HIDDEN
    N = x.shape[0]
    p = params
    h0 = jnp.maximum(x @ p["w_fc"] + p["b_fc"], 0.0)              # (N, H*W*CH)
    feat = h0.reshape(N, H, W, CH)
    padf = jnp.pad(feat, ((0, 0), (1, 1), (1, 1), (0, 0)))
    y1 = jnp.zeros((N, H * W, C), jnp.float32)
    for tap in range(9):
        dy, dx = tap // 3, tap % 3
        win = padf[:, dy:dy + H, dx:dx + W, :].reshape(N, H * W, CH)
        y1 = y1 + jnp.einsum("npc,cf->npf", win, p["w_conv"][tap])
    y1 = y1 + p["b_conv"]
    hid = jnp.maximum(p["pos_feat"] @ p["w1_pos"]
                      + (x @ p["w1_code"])[:, None, :] + p["b1"], 0.0)
    y2 = hid @ p["w2"] + p["b2"]
    out = 1.0 / (1.0 + jnp.exp(-y1)) + y2
    return out.reshape(N, H, W, C).transpose(0, 3, 1, 2)


if __name__ == "__main__":
    N = 8                       # -> B = 4 codes per step, grid = (2,)
    code_size = 32
    shape = (4, 16, 16)         # (C, H, W)

    key = jax.random.PRNGKey(0)
    k_params, k_x = jax.random.split(key)
    params = init_params(k_params, shape, code_size)
    x = jax.random.normal(k_x, (N, code_size), jnp.float32)

    out = ensemble_decoder2d_forward(x, params)
    out = jax.block_until_ready(out)
    assert out.shape == (N,) + shape, out.shape

    ref = ensemble_decoder2d_reference(x, params)
    max_err = float(jnp.max(jnp.abs(out - ref)))
    assert jnp.allclose(out, ref, rtol=2e-3, atol=2e-3), max_err

    print("KERNEL_OK")
</pallas_src>

<mosaic_0001>
module attributes {stable_mosaic.version = 11 : i64} {
  func.func @kernel(%arg0: i32, %arg1: memref<1x4x32xf32, #tpu.memory_space<vmem>>, %arg2: memref<32x256xf32, #tpu.memory_space<vmem>>, %arg3: memref<8x256xf32, #tpu.memory_space<vmem>>, %arg4: memref<256x256xf32, #tpu.memory_space<vmem>>, %arg5: memref<8x256xf32, #tpu.memory_space<vmem>>, %arg6: memref<4x72xf32, #tpu.memory_space<vmem>>, %arg7: memref<4x1xf32, #tpu.memory_space<vmem>>, %arg8: memref<9x1024xf32, #tpu.memory_space<vmem>>, %arg9: memref<64x256xf32, #tpu.memory_space<vmem>>, %arg10: memref<64x32xf32, #tpu.memory_space<vmem>>, %arg11: memref<4x64xf32, #tpu.memory_space<vmem>>, %arg12: memref<4x1xf32, #tpu.memory_space<vmem>>, %arg13: memref<4x1024xf32, #tpu.memory_space<vmem>>, %arg14: memref<72x1024xf32, #tpu.memory_space<vmem>>) attributes {dimension_semantics = [#tpu.dimension_semantics<parallel>], iteration_bounds = array<i64: 2>, scalar_prefetch = 0 : i64, scratch_operands = 1 : i64, tpu.core_type = #tpu.core_type<tc>, window_params = [{transform_indices = @transform_0, window_bounds = array<i64: 1, 4, 32>}, {pipeline_mode = #tpu.pipeline_mode<synchronous>, transform_indices = @transform_1, window_bounds = array<i64: 32, 256>}, {pipeline_mode = #tpu.pipeline_mode<synchronous>, transform_indices = @transform_2, window_bounds = array<i64: 8, 256>}, {pipeline_mode = #tpu.pipeline_mode<synchronous>, transform_indices = @transform_3, window_bounds = array<i64: 256, 256>}, {pipeline_mode = #tpu.pipeline_mode<synchronous>, transform_indices = @transform_4, window_bounds = array<i64: 8, 256>}, {pipeline_mode = #tpu.pipeline_mode<synchronous>, transform_indices = @transform_5, window_bounds = array<i64: 4, 72>}, {pipeline_mode = #tpu.pipeline_mode<synchronous>, transform_indices = @transform_6, window_bounds = array<i64: 4, 1>}, {pipeline_mode = #tpu.pipeline_mode<synchronous>, transform_indices = @transform_7, window_bounds = array<i64: 9, 1024>}, {pipeline_mode = #tpu.pipeline_mode<synchronous>, transform_indices = @transform_8, window_bounds = array<i64: 64, 256>}, {pipeline_mode = #tpu.pipeline_mode<synchronous>, transform_indices = @transform_9, window_bounds = array<i64: 64, 32>}, {pipeline_mode = #tpu.pipeline_mode<synchronous>, transform_indices = @transform_10, window_bounds = array<i64: 4, 64>}, {pipeline_mode = #tpu.pipeline_mode<synchronous>, transform_indices = @transform_11, window_bounds = array<i64: 4, 1>}, {transform_indices = @transform_12, window_bounds = array<i64: 4, 1024>}]} {
    %c0 = arith.constant 0 : index
    %c0_0 = arith.constant 0 : index
    %c0_1 = arith.constant 0 : index
    %0 = vector.load %arg1[%c0, %c0_0, %c0_1] : memref<1x4x32xf32, #tpu.memory_space<vmem>>, vector<1x4x32xf32>
    %1 = vector.shape_cast %0 : vector<1x4x32xf32> to vector<4x32xf32>
    %c0_2 = arith.constant 0 : index
    %c0_3 = arith.constant 0 : index
    %2 = vector.load %arg2[%c0_2, %c0_3] : memref<32x256xf32, #tpu.memory_space<vmem>>, vector<32x256xf32>
    %cst = arith.constant dense<0.000000e+00> : vector<4x256xf32>
    %3 = tpu.matmul %1, %2, %cst {dimension_numbers = #tpu.dot_dimension_numbers<[1], [0], [0], [1], [0, 0, 1, 1], [], []>} : vector<4x32xf32>, vector<32x256xf32>, vector<4x256xf32> -> vector<4x256xf32>
    %c0_4 = arith.constant 0 : index
    %c0_5 = arith.constant 0 : index
    %4 = vector.load %arg3[%c0_4, %c0_5] : memref<8x256xf32, #tpu.memory_space<vmem>>, vector<8x256xf32>
    %c0_6 = arith.constant 0 : index
    %c0_7 = arith.constant 0 : index
    %5 = vector.load %arg4[%c0_6, %c0_7] : memref<256x256xf32, #tpu.memory_space<vmem>>, vector<256x256xf32>
    %c0_8 = arith.constant 0 : index
    %c0_9 = arith.constant 0 : index
    %6 = vector.load %arg5[%c0_8, %c0_9] : memref<8x256xf32, #tpu.memory_space<vmem>>, vector<8x256xf32>
    %7 = vector.extract_strided_slice %3 {offsets = [0, 0], sizes = [1, 256], strides = [1, 1]} : vector<4x256xf32> to vector<1x256xf32>
    %8 = vector.broadcast %7 : vector<1x256xf32> to vector<8x256xf32>
    %9 = arith.mulf %8, %4 : vector<8x256xf32>
    %cst_10 = arith.constant dense<0.000000e+00> : vector<8x256xf32>
    %10 = tpu.matmul %9, %5, %cst_10 {dimension_numbers = #tpu.dot_dimension_numbers<[1], [0], [0], [1], [0, 0, 1, 1], [], []>} : vector<8x256xf32>, vector<256x256xf32>, vector<8x256xf32> -> vector<8x256xf32>
    %11 = arith.addf %10, %6 : vector<8x256xf32>
    %cst_11 = arith.constant 0.000000e+00 : f32
    %12 = vector.broadcast %cst_11 : f32 to vector<8x256xf32>
    %13 = arith.maximumf %11, %12 : vector<8x256xf32>
    %14 = vector.extract_strided_slice %3 {offsets = [1, 0], sizes = [1, 256], strides = [1, 1]} : vector<4x256xf32> to vector<1x256xf32>
    %15 = vector.broadcast %14 : vector<1x256xf32> to vector<8x256xf32>
    %16 = arith.mulf %15, %4 : vector<8x256xf32>
    %cst_12 = arith.constant dense<0.000000e+00> : vector<8x256xf32>
    %17 = tpu.matmul %16, %5, %cst_12 {dimension_numbers = #tpu.dot_dimension_numbers<[1], [0], [0], [1], [0, 0, 1, 1], [], []>} : vector<8x256xf32>, vector<256x256xf32>, vector<8x256xf32> -> vector<8x256xf32>
    %18 = arith.addf %17, %6 : vector<8x256xf32>
    %cst_13 = arith.constant 0.000000e+00 : f32
    %19 = vector.broadcast %cst_13 : f32 to vector<8x256xf32>
    %20 = arith.maximumf %18, %19 : vector<8x256xf32>
    %21 = vector.extract_strided_slice %3 {offsets = [2, 0], sizes = [1, 256], strides = [1, 1]} : vector<4x256xf32> to vector<1x256xf32>
    %22 = vector.broadcast %21 : vector<1x256xf32> to vector<8x256xf32>
    %23 = arith.mulf %22, %4 : vector<8x256xf32>
    %cst_14 = arith.constant dense<0.000000e+00> : vector<8x256xf32>
    %24 = tpu.matmul %23, %5, %cst_14 {dimension_numbers = #tpu.dot_dimension_numbers<[1], [0], [0], [1], [0, 0, 1, 1], [], []>} : vector<8x256xf32>, vector<256x256xf32>, vector<8x256xf32> -> vector<8x256xf32>
    %25 = arith.addf %24, %6 : vector<8x256xf32>
    %cst_15 = arith.constant 0.000000e+00 : f32
    %26 = vector.broadcast %cst_15 : f32 to vector<8x256xf32>
    %27 = arith.maximumf %25, %26 : vector<8x256xf32>
    %28 = vector.extract_strided_slice %3 {offsets = [3, 0], sizes = [1, 256], strides = [1, 1]} : vector<4x256xf32> to vector<1x256xf32>
    %29 = vector.broadcast %28 : vector<1x256xf32> to vector<8x256xf32>
    %30 = arith.mulf %29, %4 : vector<8x256xf32>
    %cst_16 = arith.constant dense<0.000000e+00> : vector<8x256xf32>
    %31 = tpu.matmul %30, %5, %cst_16 {dimension_numbers = #tpu.dot_dimension_numbers<[1], [0], [0], [1], [0, 0, 1, 1], [], []>} : vector<8x256xf32>, vector<256x256xf32>, vector<8x256xf32> -> vector<8x256xf32>
    %32 = arith.addf %31, %6 : vector<8x256xf32>
    %cst_17 = arith.constant 0.000000e+00 : f32
    %33 = vector.broadcast %cst_17 : f32 to vector<8x256xf32>
    %34 = arith.maximumf %32, %33 : vector<8x256xf32>
    %35 = tpu.concatenate %13, %20, %27, %34 in 1 : vector<8x256xf32>, vector<8x256xf32>, vector<8x256xf32>, vector<8x256xf32> -> vector<8x1024xf32>
    %c17_i32 = arith.constant 17 : i32
    %36 = tpu.dynamic_rotate %35 by %c17_i32 dim 1 : vector<8x1024xf32>, i32 -> vector<8x1024xf32>
    %c0_18 = arith.constant 0 : index
    %c0_19 = arith.constant 0 : index
    %37 = vector.load %arg8[%c0_18, %c0_19] : memref<9x1024xf32, #tpu.memory_space<vmem>>, vector<1x1024xf32>
    %38 = vector.broadcast %37 : vector<1x1024xf32> to vector<8x1024xf32>
    %39 = arith.mulf %36, %38 : vector<8x1024xf32>
    %c0_20 = arith.constant 0 : index
    %c0_21 = arith.constant 0 : index
    %40 = vector.load %arg14[%c0_20, %c0_21] : memref<72x1024xf32, #tpu.memory_space<vmem>>, vector<8x1024xf32>
    tpu.vector_store %arg14[%c0_20, %c0_21], %39 {strides = array<i32>} : memref<72x1024xf32, #tpu.memory_space<vmem>>, vector<8x1024xf32>,
    %c16_i32 = arith.constant 16 : i32
    %41 = tpu.dynamic_rotate %35 by %c16_i32 dim 1 : vector<8x1024xf32>, i32 -> vector<8x1024xf32>
    %c1 = arith.constant 1 : index
    %c0_22 = arith.constant 0 : index
    %42 = vector.load %arg8[%c1, %c0_22] : memref<9x1024xf32, #tpu.memory_space<vmem>>, vector<1x1024xf32>
    %43 = vector.broadcast %42 : vector<1x1024xf32> to vector<8x1024xf32>
    %44 = arith.mulf %41, %43 : vector<8x1024xf32>
    %c8 = arith.constant 8 : index
    %c0_23 = arith.constant 0 : index
    %45 = vector.load %arg14[%c8, %c0_23] : memref<72x1024xf32, #tpu.memory_space<vmem>>, vector<8x1024xf32>
    tpu.vector_store %arg14[%c8, %c0_23], %44 {strides = array<i32>} : memref<72x1024xf32, #tpu.memory_space<vmem>>, vector<8x1024xf32>,
    %c15_i32 = arith.constant 15 : i32
    %46 = tpu.dynamic_rotate %35 by %c15_i32 dim 1 : vector<8x1024xf32>, i32 -> vector<8x1024xf32>
    %c2 = arith.constant 2 : index
    %c0_24 = arith.constant 0 : index
    %47 = vector.load %arg8[%c2, %c0_24] : memref<9x1024xf32, #tpu.memory_space<vmem>>, vector<1x1024xf32>
    %48 = vector.broadcast %47 : vector<1x1024xf32> to vector<8x1024xf32>
    %49 = arith.mulf %46, %48 : vector<8x1024xf32>
    %c16 = arith.constant 16 : index
    %c0_25 = arith.constant 0 : index
    %50 = vector.load %arg14[%c16, %c0_25] : memref<72x1024xf32, #tpu.memory_space<vmem>>, vector<8x1024xf32>
    tpu.vector_store %arg14[%c16, %c0_25], %49 {strides = array<i32>} : memref<72x1024xf32, #tpu.memory_space<vmem>>, vector<8x1024xf32>,
    %c1_i32 = arith.constant 1 : i32
    %51 = tpu.dynamic_rotate %35 by %c1_i32 dim 1 : vector<8x1024xf32>, i32 -> vector<8x1024xf32>
    %c3 = arith.constant 3 : index
    %c0_26 = arith.constant 0 : index
    %52 = vector.load %arg8[%c3, %c0_26] : memref<9x1024xf32, #tpu.memory_space<vmem>>, vector<1x1024xf32>
    %53 = vector.broadcast %52 : vector<1x1024xf32> to vector<8x1024xf32>
    %54 = arith.mulf %51, %53 : vector<8x1024xf32>
    %c24 = arith.constant 24 : index
    %c0_27 = arith.constant 0 : index
    %55 = vector.load %arg14[%c24, %c0_27] : memref<72x1024xf32, #tpu.memory_space<vmem>>, vector<8x1024xf32>
    tpu.vector_store %arg14[%c24, %c0_27], %54 {strides = array<i32>} : memref<72x1024xf32, #tpu.memory_space<vmem>>, vector<8x1024xf32>,
    %c32 = arith.constant 32 : index
    %c0_28 = arith.constant 0 : index
    %56 = vector.load %arg14[%c32, %c0_28] : memref<72x1024xf32, #tpu.memory_space<vmem>>, vector<8x1024xf32>
    tpu.vector_store %arg14[%c32, %c0_28], %35 {strides = array<i32>} : memref<72x1024xf32, #tpu.memory_space<vmem>>, vector<8x1024xf32>,
    %c1023_i32 = arith.constant 1023 : i32
    %57 = tpu.dynamic_rotate %35 by %c1023_i32 dim 1 : vector<8x1024xf32>, i32 -> vector<8x1024xf32>
    %c5 = arith.constant 5 : index
    %c0_29 = arith.constant 0 : index
    %58 = vector.load %arg8[%c5, %c0_29] : memref<9x1024xf32, #tpu.memory_space<vmem>>, vector<1x1024xf32>
    %59 = vector.broadcast %58 : vector<1x1024xf32> to vector<8x1024xf32>
    %60 = arith.mulf %57, %59 : vector<8x1024xf32>
    %c40 = arith.constant 40 : index
    %c0_30 = arith.constant 0 : index
    %61 = vector.load %arg14[%c40, %c0_30] : memref<72x1024xf32, #tpu.memory_space<vmem>>, vector<8x1024xf32>
    tpu.vector_store %arg14[%c40, %c0_30], %60 {strides = array<i32>} : memref<72x1024xf32, #tpu.memory_space<vmem>>, vector<8x1024xf32>,
    %c1009_i32 = arith.constant 1009 : i32
    %62 = tpu.dynamic_rotate %35 by %c1009_i32 dim 1 : vector<8x1024xf32>, i32 -> vector<8x1024xf32>
    %c6 = arith.constant 6 : index
    %c0_31 = arith.constant 0 : index
    %63 = vector.load %arg8[%c6, %c0_31] : memref<9x1024xf32, #tpu.memory_space<vmem>>, vector<1x1024xf32>
    %64 = vector.broadcast %63 : vector<1x1024xf32> to vector<8x1024xf32>
    %65 = arith.mulf %62, %64 : vector<8x1024xf32>
    %c48 = arith.constant 48 : index
    %c0_32 = arith.constant 0 : index
    %66 = vector.load %arg14[%c48, %c0_32] : memref<72x1024xf32, #tpu.memory_space<vmem>>, vector<8x1024xf32>
    tpu.vector_store %arg14[%c48, %c0_32], %65 {strides = array<i32>} : memref<72x1024xf32, #tpu.memory_space<vmem>>, vector<8x1024xf32>,
    %c1008_i32 = arith.constant 1008 : i32
    %67 = tpu.dynamic_rotate %35 by %c1008_i32 dim 1 : vector<8x1024xf32>, i32 -> vector<8x1024xf32>
    %c7 = arith.constant 7 : index
    %c0_33 = arith.constant 0 : index
    %68 = vector.load %arg8[%c7, %c0_33] : memref<9x1024xf32, #tpu.memory_space<vmem>>, vector<1x1024xf32>
    %69 = vector.broadcast %68 : vector<1x1024xf32> to vector<8x1024xf32>
    %70 = arith.mulf %67, %69 : vector<8x1024xf32>
    %c56 = arith.constant 56 : index
    %c0_34 = arith.constant 0 : index
    %71 = vector.load %arg14[%c56, %c0_34] : memref<72x1024xf32, #tpu.memory_space<vmem>>, vector<8x1024xf32>
    tpu.vector_store %arg14[%c56, %c0_34], %70 {strides = array<i32>} : memref<72x1024xf32, #tpu.memory_space<vmem>>, vector<8x1024xf32>,
    %c1007_i32 = arith.constant 1007 : i32
    %72 = tpu.dynamic_rotate %35 by %c1007_i32 dim 1 : vector<8x1024xf32>, i32 -> vector<8x1024xf32>
    %c8_35 = arith.constant 8 : index
    %c0_36 = arith.constant 0 : index
    %73 = vector.load %arg8[%c8_35, %c0_36] : memref<9x1024xf32, #tpu.memory_space<vmem>>, vector<1x1024xf32>
    %74 = vector.broadcast %73 : vector<1x1024xf32> to vector<8x1024xf32>
    %75 = arith.mulf %72, %74 : vector<8x1024xf32>
    %c64 = arith.constant 64 : index
    %c0_37 = arith.constant 0 : index
    %76 = vector.load %arg14[%c64, %c0_37] : memref<72x1024xf32, #tpu.memory_space<vmem>>, vector<8x1024xf32>
    tpu.vector_store %arg14[%c64, %c0_37], %75 {strides = array<i32>} : memref<72x1024xf32, #tpu.memory_space<vmem>>, vector<8x1024xf32>,
    %c0_38 = arith.constant 0 : index
    %c0_39 = arith.constant 0 : index
    %77 = vector.load %arg6[%c0_38, %c0_39] : memref<4x72xf32, #tpu.memory_space<vmem>>, vector<4x72xf32>
    %c0_40 = arith.constant 0 : index
    %c0_41 = arith.constant 0 : index
    %78 = vector.load %arg14[%c0_40, %c0_41] : memref<72x1024xf32, #tpu.memory_space<vmem>>, vector<72x1024xf32>
    %cst_42 = arith.constant dense<0.000000e+00> : vector<4x1024xf32>
    %79 = tpu.matmul %77, %78, %cst_42 {dimension_numbers = #tpu.dot_dimension_numbers<[1], [0], [0], [1], [0, 0, 1, 1], [], []>} : vector<4x72xf32>, vector<72x1024xf32>, vector<4x1024xf32> -> vector<4x1024xf32>
    %c0_43 = arith.constant 0 : index
    %c0_44 = arith.constant 0 : index
    %80 = vector.load %arg7[%c0_43, %c0_44] : memref<4x1xf32, #tpu.memory_space<vmem>>, vector<4x1xf32>
    %81 = vector.broadcast %80 : vector<4x1xf32> to vector<4x1024xf32>
    %82 = arith.addf %79, %81 : vector<4x1024xf32>
    %c0_45 = arith.constant 0 : index
    %c0_46 = arith.constant 0 : index
    %83 = vector.load %arg10[%c0_45, %c0_46] : memref<64x32xf32, #tpu.memory_space<vmem>>, vector<64x32xf32>
    %cst_47 = arith.constant dense<0.000000e+00> : vector<64x4xf32>
    %84 = tpu.matmul %83, %1, %cst_47 {dimension_numbers = #tpu.dot_dimension_numbers<[1], [1], [0], [0], [0, 0, 1, 0], [], []>} : vector<64x32xf32>, vector<4x32xf32>, vector<64x4xf32> -> vector<64x4xf32>
    %c0_48 = arith.constant 0 : index
    %c0_49 = arith.constant 0 : index
    %85 = vector.load %arg9[%c0_48, %c0_49] : memref<64x256xf32, #tpu.memory_space<vmem>>, vector<64x256xf32>
    %86 = vector.extract_strided_slice %84 {offsets = [0, 0], sizes = [64, 1], strides = [1, 1]} : vector<64x4xf32> to vector<64x1xf32>
    %87 = vector.broadcast %86 : vector<64x1xf32> to vector<64x256xf32>
    %88 = arith.addf %85, %87 : vector<64x256xf32>
    %cst_50 = arith.constant 0.000000e+00 : f32
    %89 = vector.broadcast %cst_50 : f32 to vector<64x256xf32>
    %90 = arith.maximumf %88, %89 : vector<64x256xf32>
    %91 = vector.extract_strided_slice %84 {offsets = [0, 1], sizes = [64, 1], strides = [1, 1]} : vector<64x4xf32> to vector<64x1xf32>
    %92 = vector.broadcast %91 : vector<64x1xf32> to vector<64x256xf32>
    %93 = arith.addf %85, %92 : vector<64x256xf32>
    %cst_51 = arith.constant 0.000000e+00 : f32
    %94 = vector.broadcast %cst_51 : f32 to vector<64x256xf32>
    %95 = arith.maximumf %93, %94 : vector<64x256xf32>
    %96 = vector.extract_strided_slice %84 {offsets = [0, 2], sizes = [64, 1], strides = [1, 1]} : vector<64x4xf32> to vector<64x1xf32>
    %97 = vector.broadcast %96 : vector<64x1xf32> to vector<64x256xf32>
    %98 = arith.addf %85, %97 : vector<64x256xf32>
    %cst_52 = arith.constant 0.000000e+00 : f32
    %99 = vector.broadcast %cst_52 : f32 to vector<64x256xf32>
    %100 = arith.maximumf %98, %99 : vector<64x256xf32>
    %101 = vector.extract_strided_slice %84 {offsets = [0, 3], sizes = [64, 1], strides = [1, 1]} : vector<64x4xf32> to vector<64x1xf32>
    %102 = vector.broadcast %101 : vector<64x1xf32> to vector<64x256xf32>
    %103 = arith.addf %85, %102 : vector<64x256xf32>
    %cst_53 = arith.constant 0.000000e+00 : f32
    %104 = vector.broadcast %cst_53 : f32 to vector<64x256xf32>
    %105 = arith.maximumf %103, %104 : vector<64x256xf32>
    %106 = tpu.concatenate %90, %95, %100, %105 in 1 : vector<64x256xf32>, vector<64x256xf32>, vector<64x256xf32>, vector<64x256xf32> -> vector<64x1024xf32>
    %c0_54 = arith.constant 0 : index
    %c0_55 = arith.constant 0 : index
    %107 = vector.load %arg11[%c0_54, %c0_55] : memref<4x64xf32, #tpu.memory_space<vmem>>, vector<4x64xf32>
    %cst_56 = arith.constant dense<0.000000e+00> : vector<4x1024xf32>
    %108 = tpu.matmul %107, %106, %cst_56 {dimension_numbers = #tpu.dot_dimension_numbers<[1], [0], [0], [1], [0, 0, 1, 1], [], []>} : vector<4x64xf32>, vector<64x1024xf32>, vector<4x1024xf32> -> vector<4x1024xf32>
    %c0_57 = arith.constant 0 : index
    %c0_58 = arith.constant 0 : index
    %109 = vector.load %arg12[%c0_57, %c0_58] : memref<4x1xf32, #tpu.memory_space<vmem>>, vector<4x1xf32>
    %110 = vector.broadcast %109 : vector<4x1xf32> to vector<4x1024xf32>
    %111 = arith.addf %108, %110 : vector<4x1024xf32>
    %cst_59 = arith.constant 0.000000e+00 : f32
    %112 = vector.broadcast %cst_59 : f32 to vector<4x1024xf32>
    %113 = arith.subf %112, %82 : vector<4x1024xf32>
    %114 = math.exp %113 : vector<4x1024xf32>
    %cst_60 = arith.constant 1.000000e+00 : f32
    %115 = vector.broadcast %cst_60 : f32 to vector<4x1024xf32>
    %116 = arith.addf %115, %114 : vector<4x1024xf32>
    %117 = tpu.reciprocal %116 {approx = true} : vector<4x1024xf32> -> vector<4x1024xf32>
    %118 = arith.addf %117, %111 : vector<4x1024xf32>
    %c0_61 = arith.constant 0 : index
    %c0_62 = arith.constant 0 : index
    %119 = vector.load %arg13[%c0_61, %c0_62] : memref<4x1024xf32, #tpu.memory_space<vmem>>, vector<4x1024xf32>
    tpu.vector_store %arg13[%c0_61, %c0_62], %118 {strides = array<i32>} : memref<4x1024xf32, #tpu.memory_space<vmem>>, vector<4x1024xf32>,
    return
  }
  func.func @transform_0(%arg0: i32) -> (i32, i32, i32) {
    %c0_i32 = arith.constant 0 : i32
    %c0_i32_0 = arith.constant 0 : i32
    %c0_i32_1 = arith.constant 0 : i32
    return %arg0, %c0_i32, %c0_i32_0 : i32, i32, i32
  }
  func.func @transform_1(%arg0: i32) -> (i32, i32) {
    %c0_i32 = arith.constant 0 : i32
    %c0_i32_0 = arith.constant 0 : i32
    %c0_i32_1 = arith.constant 0 : i32
    return %c0_i32, %c0_i32_0 : i32, i32
  }
  func.func @transform_2(%arg0: i32) -> (i32, i32) {
    %c0_i32 = arith.constant 0 : i32
    %c0_i32_0 = arith.constant 0 : i32
    %c0_i32_1 = arith.constant 0 : i32
    return %c0_i32, %c0_i32_0 : i32, i32
  }
  func.func @transform_3(%arg0: i32) -> (i32, i32) {
    %c0_i32 = arith.constant 0 : i32
    %c0_i32_0 = arith.constant 0 : i32
    %c0_i32_1 = arith.constant 0 : i32
    return %c0_i32, %c0_i32_0 : i32, i32
  }
  func.func @transform_4(%arg0: i32) -> (i32, i32) {
    %c0_i32 = arith.constant 0 : i32
    %c0_i32_0 = arith.constant 0 : i32
    %c0_i32_1 = arith.constant 0 : i32
    return %c0_i32, %c0_i32_0 : i32, i32
  }
  func.func @transform_5(%arg0: i32) -> (i32, i32) {
    %c0_i32 = arith.constant 0 : i32
    %c0_i32_0 = arith.constant 0 : i32
    %c0_i32_1 = arith.constant 0 : i32
    return %c0_i32, %c0_i32_0 : i32, i32
  }
  func.func @transform_6(%arg0: i32) -> (i32, i32) {
    %c0_i32 = arith.constant 0 : i32
    %c0_i32_0 = arith.constant 0 : i32
    %c0_i32_1 = arith.constant 0 : i32
    return %c0_i32, %c0_i32_0 : i32, i32
  }
  func.func @transform_7(%arg0: i32) -> (i32, i32) {
    %c0_i32 = arith.constant 0 : i32
    %c0_i32_0 = arith.constant 0 : i32
    %c0_i32_1 = arith.constant 0 : i32
    return %c0_i32, %c0_i32_0 : i32, i32
  }
  func.func @transform_8(%arg0: i32) -> (i32, i32) {
    %c0_i32 = arith.constant 0 : i32
    %c0_i32_0 = arith.constant 0 : i32
    %c0_i32_1 = arith.constant 0 : i32
    return %c0_i32, %c0_i32_0 : i32, i32
  }
  func.func @transform_9(%arg0: i32) -> (i32, i32) {
    %c0_i32 = arith.constant 0 : i32
    %c0_i32_0 = arith.constant 0 : i32
    %c0_i32_1 = arith.constant 0 : i32
    return %c0_i32, %c0_i32_0 : i32, i32
  }
  func.func @transform_10(%arg0: i32) -> (i32, i32) {
    %c0_i32 = arith.constant 0 : i32
    %c0_i32_0 = arith.constant 0 : i32
    %c0_i32_1 = arith.constant 0 : i32
    return %c0_i32, %c0_i32_0 : i32, i32
  }
  func.func @transform_11(%arg0: i32) -> (i32, i32) {
    %c0_i32 = arith.constant 0 : i32
    %c0_i32_0 = arith.constant 0 : i32
    %c0_i32_1 = arith.constant 0 : i32
    return %c0_i32, %c0_i32_0 : i32, i32
  }
  func.func @transform_12(%arg0: i32) -> (i32, i32) {
    %c0_i32 = arith.constant 0 : i32
    %c0_i32_0 = arith.constant 0 : i32
    return %c0_i32, %arg0 : i32, i32
  }
}

</mosaic_0001>

<bundles_post_ra>
// kernel: tpu_custom_call.1
= control target key start
LH: loop header
LB: loop body
LE: loop exit
PB: predicated region body
PF: predicated region fallthrough
CT: control target
= control target key end

     0   :  { %s5396_s0 = inlined_call_operand.hbm [shape: f32[2,4,32], index: 0, kind: input, shape index: {}]   ;;  %s5397_s1 = inlined_call_operand.hbm [shape: f32[32,256], index: 1, kind: input, shape index: {}]   ;;  %s5398_s2 = inlined_call_operand.hbm [shape: f32[8,256], index: 2, kind: input, shape index: {}]   ;;  %s5399_s3 = inlined_call_operand.hbm [shape: f32[256,256], index: 3, kind: input, shape index: {}]   ;;  %s5400_s4 = inlined_call_operand.hbm [shape: f32[8,256], index: 4, kind: input, shape index: {}]   ;;  %s5401_s5 = inlined_call_operand.vmem [shape: f32[4,72], index: 5, kind: input, shape index: {}]   ;;  %s5402_s6 = inlined_call_operand.vmem [shape: f32[4,1], index: 6, kind: input, shape index: {}]   ;;  %s5403_s7 = inlined_call_operand.vmem [shape: f32[9,1024], index: 7, kind: input, shape index: {}]   ;;  %s5404_s8 = inlined_call_operand.hbm [shape: f32[64,256], index: 8, kind: input, shape index: {}]   ;;  %s5405_s9 = inlined_call_operand.vmem [shape: f32[64,32], index: 9, kind: input, shape index: {}]   ;;  %s5406_s10 = inlined_call_operand.vmem [shape: f32[4,64], index: 10, kind: input, shape index: {}]   ;;  %s5407_s11 = inlined_call_operand.vmem [shape: f32[4,1], index: 11, kind: input, shape index: {}]   ;;  %s5408_s12 = inlined_call_operand.hbm [shape: f32[4,2048], index: 12, kind: output, shape index: {}]  }
   0x1   :  { %5427 = sst [smem:[#allocation30_spill]] %s5402_s6 }
   0x2   :  { %5428 = sst [smem:[#allocation31_spill]] %s5406_s10 }
   0x3   :  { %5429 = sst [smem:[#allocation32_spill]] %s5407_s11 }
   0x4   :  { %5430 = sst [smem:[#allocation33_spill]] %s5408_s12 }
   0x5   :  { %17 = vsyncpa [#allocation4], 0 }
   0x6   :  { %19 = vsyncpa [#allocation4 + $0x1], 0 }
   0x7   :  { %20 = vsyncpa [#allocation7], 0 }
   0x8   :  { %21 = vsyncpa [#allocation10], 0 }
   0x9   :  { %22 = vsyncpa [#allocation13], 0 }
   0xa   :  { %23 = vsyncpa [#allocation5], 0 }
   0xb   :  { %25 = vsyncpa [#allocation5 + $0x1], 0  ;;  %s3943_s21 = smov 0   ;;  %s3945_s22 = smov 0  }
   0xc   :  { %s3947_s23 = smov 0   ;;  %s3949_s24 = smov 0  }
   0xd LB: > { %s3856_s25 = smov [#allocation6]   ;;  %s3964_s27 = sadd.s32 4294967295, %s3854_s24   ;;  %s3854_s24 = sphi %s3949_s24, %s5479_s24   ;;  %s3850_s23 = sphi %s3947_s23, %s5478_s23   ;;  %s3846_s22 = sphi %s3945_s22, %s5477_s22   ;;  %s3842_s21 = sphi %s3943_s21, %s5476_s21  }
   0xe   : > { %s331_s26 = sshll.u32 %s3856_s25, 4  ;;  %p2961_p0 = scmp.ge.s32.totalorder %s3854_s24, 1  ;;  %s3969_s26 = int_to_ptr.vmem [resolvable:$true] %s331_s26 }
   0xf   : > { %p5411_p1 = scmp.eq.s32.totalorder %s3964_s27, 0  ;;  %p319_p2 = scmp.lt.s32.totalorder %s3854_s24, 3 }
  0x10   : > { %s3857_s29 = smov [#allocation9]   ;;  %s3858_s14 = smov [#allocation8]  }
  0x11   : > { %p3971_p3 = pnand %p2961_p0, %p319_p2  ;;  %s355_s30 = sshll.u32 %s3857_s29, 4  ;;  %s3984_s30 = int_to_ptr.vmem [resolvable:$true] %s355_s30 }
  0x12   : > { %s345_s15 = sshll.u32 %s3858_s14, 4  ;;  %s3606_s18 = scalar_lea.hbm %s5397_s1, 1024  ;;  %s3986_s15 = int_to_ptr.vmem [resolvable:$true] %s345_s15 }
  0x13   : > { %s5431_s28 = scalar_select %p3971_p3, 1, 0 }
  0x14   : > { %p3455_p5 = pneg %p3971_p3  ;;  %p3607_p7 = scmp.ne.s32.totalorder %s5397_s1, %s3606_s18 }
  0x15   : > { %p3613_p11 = scmp.lt.u32.totalorder %s3606_s18, %s5397_s1 }
  0x16   : > { %p3980_p6 = pnand %p3455_p5, %p5411_p1 }
  0x18   : > { %p3996_p8 = pneg %p3980_p6 }
  0x1a   : > { %p3609_p9 = pnand %p3996_p8, %p3607_p7 }
  0x1c   : > { %p3610_p10 = pneg %p3609_p9 }
  0x1e   : > { %p3615_p12 = pnand %p3613_p11, %p3610_p10 }
  0x20   : > { %3618 = shalt.err (!%p3615_p12)
}
  0x21   : > { %s3619_s16 = scalar_lea.vmem %s3969_s26, 1024  ;;  %p3627_p5 = scmp.lt.s32.totalorder %s3969_s26, %s3969_s26 }
  0x22   : > { %p3620_p13 = scmp.ne.s32.totalorder %s3969_s26, %s3619_s16  ;;  %p3628_p4 = scmp.lt.s32.totalorder %s3619_s16, %s3619_s16 }
  0x24   : > { %p3622_p0 = pnand %p3620_p13, %p3996_p8  ;;  %p3629_p7 = por %p3628_p4, %p3627_p5 }
  0x26   : > { %p3623_p2 = pneg %p3622_p0 }
  0x28   : > { %p3630_p9 = pnand %p3629_p7, %p3623_p2 }
  0x2a   : > { %3633 = shalt.err (!%p3630_p9)
}
  0x2b   : > { %s5410_s17 = smov 256   ;;  %s3860_s18 = smov 16  }
  0x2c   : > { %3458 = dma.hbm_to_vmem [thread:$0]  (!%p3980_p6), %s5397_s1, 1024, %s3969_s26, [#allocation7], %s5410_s17, %s5410_s17, %s3860_s18  }
  0x2d   : > { %s3634_s16 = scalar_lea.hbm %s5399_s3, 8192 }
  0x2e   : > { %p3635_p4 = scmp.ne.s32.totalorder %s5399_s3, %s3634_s16  ;;  %p3641_p12 = scmp.lt.u32.totalorder %s3634_s16, %s5399_s3 }
  0x30   : > { %p3637_p10 = pnand %p3635_p4, %p3996_p8 }
  0x32   : > { %p3638_p11 = pneg %p3637_p10 }
  0x34   : > { %p3643_p13 = pnand %p3641_p12, %p3638_p11 }
  0x36   : > { %3646 = shalt.err (!%p3643_p13)
}
  0x37   : > { %s3647_s26 = scalar_lea.vmem %s3984_s30, 8192  ;;  %p3655_p7 = scmp.lt.s32.totalorder %s3984_s30, %s3984_s30 }
  0x38   : > { %p3648_p0 = scmp.ne.s32.totalorder %s3984_s30, %s3647_s26  ;;  %p3656_p9 = scmp.lt.s32.totalorder %s3647_s26, %s3647_s26 }
  0x3a   : > { %p3650_p2 = pnand %p3648_p0, %p3996_p8  ;;  %p3657_p4 = por %p3656_p9, %p3655_p7 }
  0x3c   : > { %p3651_p5 = pneg %p3650_p2 }
  0x3e   : > { %p3658_p10 = pnand %p3657_p4, %p3651_p5 }
  0x40   : > { %3661 = shalt.err (!%p3658_p10)
}
  0x41   : > { %3464 = dma.hbm_to_vmem [thread:$0]  (!%p3980_p6), %s5399_s3, 8192, %s3984_s30, [#allocation10], %s5410_s17, %s5410_s17, %s3860_s18  }
  0x42   : > { %s3662_s19 = scalar_lea.hbm %s5398_s2, 256 }
  0x43   : > { %p3663_p11 = scmp.ne.s32.totalorder %s5398_s2, %s3662_s19  ;;  %p3669_p0 = scmp.lt.u32.totalorder %s3662_s19, %s5398_s2 }
  0x45   : > { %p3665_p12 = pnand %p3663_p11, %p3996_p8 }
  0x47   : > { %p3666_p13 = pneg %p3665_p12 }
  0x49   : > { %p3671_p2 = pnand %p3669_p0, %p3666_p13 }
  0x4b   : > { %3674 = shalt.err (!%p3671_p2)
}
  0x4c   : > { %s3675_s30 = scalar_lea.vmem %s3986_s15, 256  ;;  %p3683_p4 = scmp.lt.s32.totalorder %s3986_s15, %s3986_s15 }
  0x4d   : > { %p3676_p5 = scmp.ne.s32.totalorder %s3986_s15, %s3675_s30  ;;  %p3684_p10 = scmp.lt.s32.totalorder %s3675_s30, %s3675_s30 }
  0x4f   : > { %p3678_p7 = pnand %p3676_p5, %p3996_p8  ;;  %p3685_p11 = por %p3684_p10, %p3683_p4 }
  0x51   : > { %p3679_p9 = pneg %p3678_p7 }
  0x53   : > { %p3686_p12 = pnand %p3685_p11, %p3679_p9 }
  0x55   : > { %3689 = shalt.err (!%p3686_p12)
}
  0x56   : > { %3461 = dma.hbm_to_vmem [thread:$0]  (!%p3980_p6), %s5398_s2, 256, %s3986_s15, [#allocation7]  }
  0x57   : > { %s3861_s10 = smov [#allocation11]   ;;  %s3862_s12 = smov [#allocation12]  }
  0x58   : > { %s369_s11 = sshll.u32 %s3861_s10, 4  ;;  %s388_s19 = sshll.u32 %s3862_s12, 4  ;;  %s370_s11 = int_to_ptr.vmem [resolvable:$true] %s369_s11  ;;  %s389_s19 = int_to_ptr.vmem [resolvable:$true] %s388_s19 }
  0x59   : > { %s3690_s14 = scalar_lea.hbm %s5400_s4, 256 }
  0x5a   : > { %p3691_p13 = scmp.ne.s32.totalorder %s5400_s4, %s3690_s14  ;;  %p3697_p5 = scmp.lt.u32.totalorder %s3690_s14, %s5400_s4 }
  0x5c   : > { %p3693_p0 = pnand %p3691_p13, %p3996_p8 }
  0x5e   : > { %p3694_p2 = pneg %p3693_p0 }
  0x60   : > { %p3699_p7 = pnand %p3697_p5, %p3694_p2 }
  0x62   : > { %3702 = shalt.err (!%p3699_p7)
}
  0x63   : > { %s3703_s15 = scalar_lea.vmem %s370_s11, 256  ;;  %p3711_p11 = scmp.lt.s32.totalorder %s370_s11, %s370_s11 }
  0x64   : > { %p3704_p9 = scmp.ne.s32.totalorder %s370_s11, %s3703_s15  ;;  %p3712_p12 = scmp.lt.s32.totalorder %s3703_s15, %s3703_s15 }
  0x66   : > { %p3706_p4 = pnand %p3704_p9, %p3996_p8  ;;  %p3713_p1 = por %p3712_p12, %p3711_p11 }
  0x68   : > { %p3707_p10 = pneg %p3706_p4 }
  0x6a   : > { %p3714_p3 = pnand %p3713_p1, %p3707_p10 }
  0x6c   : > { %3717 = shalt.err (!%p3714_p3)
}
  0x6d   : > { %3467 = dma.hbm_to_vmem [thread:$0]  (!%p3980_p6), %s5400_s4, 256, %s370_s11, [#allocation10]  }
  0x6e   : > { %s3718_s20 = scalar_lea.hbm %s5404_s8, 2048 }
  0x6f   : > { %p3719_p13 = scmp.ne.s32.totalorder %s5404_s8, %s3718_s20  ;;  %p3725_p3 = scmp.lt.u32.totalorder %s3718_s20, %s5404_s8 }
  0x71   : > { %p3721_p0 = pnand %p3719_p13, %p3996_p8 }
  0x73   : > { %p3722_p1 = pneg %p3721_p0 }
  0x75   : > { %p3727_p2 = pnand %p3725_p3, %p3722_p1 }
  0x77   : > { %3730 = shalt.err (!%p3727_p2)
}
  0x78   : > { %s3731_s26 = scalar_lea.vmem %s389_s19, 2048  ;;  %p3739_p4 = scmp.lt.s32.totalorder %s389_s19, %s389_s19 }
  0x79   : > { %p3732_p5 = scmp.ne.s32.totalorder %s389_s19, %s3731_s26  ;;  %p3740_p10 = scmp.lt.s32.totalorder %s3731_s26, %s3731_s26 }
  0x7b   : > { %p3734_p7 = pnand %p3732_p5, %p3996_p8  ;;  %p3741_p11 = por %p3740_p10, %p3739_p4 }
  0x7d   : > { %p3735_p9 = pneg %p3734_p7 }
  0x7f   : > { %p3742_p12 = pnand %p3741_p11, %p3735_p9 }
  0x81   : > { %3745 = shalt.err (!%p3742_p12)
}
  0x82   : > { %s5434_s11 = smov 256   ;;  %s2960_s13 = sadd.s32 4294967294, %s3854_s24  }
  0x83   : > { %3470 = dma.hbm_to_vmem [thread:$0]  (!%p3980_p6), %s5404_s8, 2048, %s389_s19, [#allocation13], %s5434_s11, %s5434_s11, %s3860_s18  }
  0x84   : > { %s4110_s25 = sadd.s32 1, %s3854_s24   ;;  %s38_s10 = sadd.s32 1, %s3850_s23 }
  0x85   : > { %s35_s17 = ssub.s32 %s3854_s24, %s4110_s25  ;;  %p45_p8 = scmp.ne.s32.totalorder %s3850_s23, %s3846_s22 }
  0x86   : > { %p36_p13 = scmp.eq.s32.totalorder %s35_s17, 0  ;;  %p46_p0 = scmp.eq.s32.totalorder %s3854_s24, 0 }
  0x87   : > { %p51_p1 = scmp.ne.s32.totalorder %s3846_s22, %s3842_s21  ;;  %p306_p3 = scmp.eq.s32.totalorder %s3964_s27, 1 }
  0x88   : > { %s4122_s12 = scalar_select %p36_p13, %s3850_s23, %s38_s10  }
  0x89   : > { %p47_p2 = por %p46_p0, %p45_p8  ;;  %p5435_p5 = scmp.eq.s32.totalorder %s3964_s27, 0 }
  0x8a   : > { %p4130_p6 = por %p306_p3, %p45_p8  ;;  %p312_p9 = scmp.eq.s32.totalorder %s2960_s13, 1 }
  0x8b   : > { %p4126_p7 = por %p5435_p5, %p51_p1  ;;  %p3484_p4 = scmp.lt.s32.totalorder %s3854_s24, 2 }
  0x8c   : > { %s5437_s18 = scalar_select %p4130_p6, 1, 0 }
  0x8d   : > { %s411_s19 = sand.u32 1, %s3850_s23   ;;  %p4136_p10 = por %p312_p9, %p51_p1 }
  0x8e   : > { %s2968_s14 = sshll.u32 %s411_s19, 2  ;;  %s2969_s16 = sshll.u32 %s3854_s24, 6 }
  0x8f   : > { %s5438_s29 = scalar_select %p4136_p10, 1, 0 }
  0x90   : > { %s4144_s11 = scalar_lea.hbm %s5396_s0, %s2969_s16  ;;  %s415_s15 = scalar_lea.vmem [#allocation3], %s2968_s14 }
  0x91   : > { %s422_s6 = sshll.u32 %s415_s15, 4  ;;  %p4146_p11 = pnand %p3484_p4, %p47_p2  ;;  %s4150_s6 = int_to_ptr.vmem [resolvable:$true] %s422_s6 }
  0x92   : > { %s412_s10 = scalar_lea.sflag [#allocation4], %s411_s19  ;;  %s3746_s17 = scalar_lea.hbm %s4144_s11, 64 }
  0x93   : > { %p3747_p12 = scmp.ne.s32.totalorder %s4144_s11, %s3746_s17  ;;  %p3748_p8 = pneg %p4146_p11 }
  0x94   : > { %s3751_s30 = scalar_lea.hbm %s5396_s0, 128  ;;  %p3752_p1 = scmp.lt.u32.totalorder %s4144_s11, %s5396_s0 }
  0x95   : > { %p3749_p13 = pnand %p3748_p8, %p3747_p12  ;;  %p3753_p3 = scmp.lt.u32.totalorder %s3751_s30, %s3746_s17 }
  0x96   : > { %p3755_p5 = scmp.lt.u32.totalorder %s3746_s17, %s4144_s11 }
  0x97   : > { %p3750_p0 = pneg %p3749_p13  ;;  %p3754_p2 = por %p3753_p3, %p3752_p1 }
  0x99   : > { %p3756_p9 = por %p3755_p5, %p3754_p2 }
  0x9b   : > { %p3757_p4 = pnand %p3756_p9, %p3750_p0 }
  0x9d   : > { %3760 = shalt.err (!%p3757_p4)
}
  0x9e   : > { %s3761_s19 = scalar_lea.vmem %s4150_s6, 64  ;;  %s3863_s16 = smov [#allocation3]  }
  0x9f   : > { %p3762_p12 = scmp.ne.s32.totalorder %s4150_s6, %s3761_s19  ;;  %s3766_s14 = sshll.u32 %s3863_s16, 4  ;;  %s3767_s14 = int_to_ptr.vmem [resolvable:$false] %s3766_s14 }
  0xa0   : > { %s3768_s26 = scalar_lea.vmem %s3767_s14, 128  ;;  %p3769_p6 = scmp.lt.s32.totalorder %s4150_s6, %s3767_s14 }
  0xa1   : > { %p3764_p13 = pnand %p3762_p12, %p3748_p8  ;;  %p3770_p1 = scmp.lt.s32.totalorder %s3768_s26, %s3761_s19 }
  0xa3   : > { %p3765_p10 = pneg %p3764_p13  ;;  %p3771_p3 = por %p3770_p1, %p3769_p6 }
  0xa5   : > { %p3772_p2 = pnand %p3771_p3, %p3765_p10 }
  0xa7   : > { %3775 = shalt.err (!%p3772_p2)
}
  0xa8   : > { %3474 = dma.hbm_to_vmem [thread:$0]  (!%p4146_p11), %s4144_s11, 64, %s4150_s6, %s412_s10  }
  0xa9   : > { %p5440_p0 = scmp.ne.s32.totalorder %s5431_s28, 0 }
  0xab   : > { %431 = sbr.rel (%p5440_p0) target bundleno = 1551 (0x60f), region = 68 }
  0xb2   : > { %s4180_s17 = sand.u32 1, %s3846_s22  }
  0xb3   : > { %s2971_s30 = sshll.u32 %s4180_s17, 2  ;;  %s434_s15 = scalar_lea.sflag [#allocation4], %s4180_s17 }
  0xb4   : > { %s4184_s19 = scalar_lea.vmem [#allocation3], %s2971_s30 }
  0xb5   : > { %3821 = dma.done.wait (%p4126_p7), %s434_s15, 64  }
  0xb6   : > { %3823 = vsyncadd (%p4126_p7), %s434_s15, 4294967232  ;;  %p5441_p6 = scmp.eq.s32.totalorder %s3964_s27, 0 }
  0xb8   : > { %3825 = dma.done.wait (%p5441_p6), [#allocation7], 1280   ;;  %p5442_p10 = pmov %p5441_p6 }
  0xb9   : > { %p5443_p11 = pmov %p5441_p6 }
  0xba   : > { %3827 = vsyncadd (%p5442_p10), [#allocation7], 4294966016 }
  0xbb   : > { %3829 = dma.done.wait (%p5443_p11), [#allocation10], 8448   ;;  %p5444_p8 = pmov %p5441_p6 }
  0xbc   : > { %p5445_p5 = pmov %p5441_p6 }
  0xbd   : > { %3831 = vsyncadd (%p5444_p8), [#allocation10], 4294958848 }
  0xbe   : > { %3833 = dma.done.wait (%p5445_p5), [#allocation13], 2048   ;;  %p5446_p9 = pmov %p5445_p5 }
  0xbf   : > { %v5415_v0 = vmov 0.0   ;;  %v501_v1 = vld [vmem:[#allocation6 + $0x8] sm:$0xff]  ;;  %v503_v2 = vld [vmem:[#allocation6 + $0x18] sm:$0xff]  ;;  %v500_v3 = vld [vmem:[#allocation6] sm:$0xff]  ;;  %vm508_vm0 = vcmask 261120   ;;  %s3865_s28 = smov 16  }
  0xc0   : > { %3835 = vsyncadd (%p5446_p9), [#allocation13], 4294965248  ;;  %576 = vmatprep.mubr.f32.mxu0 %v5415_v0  ;;  %v3039_v4 = vpack.c.bf16 %v503_v2, %v501_v1  ;;  %v502_v5 = vld [vmem:[#allocation6 + $0x10] sm:$0xff]  ;;  %v505_v6 = vld [vmem:[#allocation6 + $0x28] sm:$0xff]  ;;  %s3866_s20 = smov 17   ;;  %s3867_s11 = smov 127  }
  0xc1   : > { %v507_v7 = vld [vmem:[#allocation6 + $0x38] sm:$0xff]  ;;  %v3041_v8 = vpack.c.bf16 %v502_v5, %v500_v3  ;;  %v504_v10 = vld [vmem:[#allocation6 + $0x20] sm:$0xff]  ;;  %v506_v11 = vld [vmem:[#allocation6 + $0x30] sm:$0xff]  ;;  %s3868_s6 = smov 15   ;;  %s5414_s13 = smov 113   ;;  %vm1759_vm9 = vcmask 588800  }
  0xc2   : > { %v3043_v9 = vpack.c.bf16 %v507_v7, %v505_v6  ;;  %3040 = vmatprep.subr.bf16.mxu0 %v3039_v4  ;;  %v586_v12 = vld [vmem:[#allocation9 + $0x8] sm:$0xff]  ;;  %v588_v13 = vld [vmem:[#allocation9 + $0x18] sm:$0xff]  ;;  %v585_v14 = vld [vmem:[#allocation9] sm:$0xff]  ;;  %v3045_v15 = vpack.c.bf16 %v506_v11, %v504_v10  ;;  %s3870_s10 = smov 1   ;;  %s3871_s16 = smov 111   ;;  %vm2471_vm10 = vcmask 523264  }
  0xc3   : > { %3042 = vmatpush1.bf16.msra.mxu0 %v3041_v8  ;;  %v4203_v16 = vpack.c.bf16 %v588_v13, %v586_v12  ;;  %v587_v17 = vld [vmem:[#allocation9 + $0x10] sm:$0xff]  ;;  %v590_v18 = vld [vmem:[#allocation9 + $0x28] sm:$0xff]  ;;  %v592_v19 = vld [vmem:[#allocation9 + $0x38] sm:$0xff]  ;;  %s3872_s14 = smov 112   ;;  %s5471_s30 = sld [smem:[#allocation31_spill]] }
  0xc4   : > { %3044 = vmatprep.subr.bf16.mxu0 %v3043_v9  ;;  %v4205_v20 = vpack.c.bf16 %v587_v17, %v585_v14  ;;  %v4207_v21 = vpack.c.bf16 %v592_v19, %v590_v18  ;;  %v589_v22 = vld [vmem:[#allocation9 + $0x20] sm:$0xff]  ;;  %v591_v23 = vld [vmem:[#allocation9 + $0x30] sm:$0xff]  ;;  %v594_v24 = vld [vmem:[#allocation9 + $0x48] sm:$0xff]  ;;  %s2977_s15 = sshll.u32 %s4180_s17, 5  ;;  %p5473_p4 = scmp.ne.s32.totalorder %s5437_s18, 0 }
  0xc5   : > { %3048 = vmatprep.subr.bf16.mxu1 %v4203_v16  ;;  %v596_v25 = vld [vmem:[#allocation9 + $0x58] sm:$0xff]  ;;  %v4211_v26 = vpack.c.bf16 %v591_v23, %v589_v22  ;;  %v499_v27 = vld [vmem:[%s4184_s19] sm:$0xf]  ;;  %v593_v29 = vld [vmem:[#allocation9 + $0x40] sm:$0xff] }
  0xc6   : > { %3050 = vmatpush1.bf16.msra.mxu1 %v4205_v20  ;;  %v4215_v28 = vpack.c.bf16 %v596_v25, %v594_v24  ;;  %v595_v30 = vld [vmem:[#allocation9 + $0x50] sm:$0xff]  ;;  %v598_v31 = vld [vmem:[#allocation9 + $0x68] sm:$0xff]  ;;  %v600_v32 = vld [vmem:[#allocation9 + $0x78] sm:$0xff] }
  0xc7   : > { %3046 = vmatpush1.bf16.msra.mxu0 %v3045_v15  ;;  %3052 = vmatprep.subr.bf16.mxu1 %v4207_v21  ;;  %v4220_v33 = vpack.c.bf16 %v595_v30, %v593_v29  ;;  %v4224_v34 = vpack.c.bf16 %v600_v32, %v598_v31  ;;  %v597_v35 = vld [vmem:[#allocation9 + $0x60] sm:$0xff]  ;;  %v599_v36 = vld [vmem:[#allocation9 + $0x70] sm:$0xff]  ;;  %v602_v37 = vld [vmem:[#allocation9 + $0x88] sm:$0xff] }
  0xc8   : > { %3112 = vmatprep.subr.bf16.mxu0 %v4203_v16  ;;  %v604_v38 = vld [vmem:[#allocation9 + $0x98] sm:$0xff]  ;;  %v4228_v39 = vpack.c.bf16 %v599_v36, %v597_v35  ;;  %v601_v41 = vld [vmem:[#allocation9 + $0x80] sm:$0xff]  ;;  %v603_v42 = vld [vmem:[#allocation9 + $0x90] sm:$0xff] }
  0xc9   : > { %v4232_v40 = vpack.c.bf16 %v604_v38, %v602_v37  ;;  %v606_v43 = vld [vmem:[#allocation9 + $0xa8] sm:$0xff]  ;;  %v608_v44 = vld [vmem:[#allocation9 + $0xb8] sm:$0xff]  ;;  %v4236_v45 = vpack.c.bf16 %v603_v42, %v601_v41  ;;  %v605_v47 = vld [vmem:[#allocation9 + $0xa0] sm:$0xff] }
  0xca   : > { %2978 = vmatmul.mubr.msk.f32.vlgmr.msra.gmra.mrb[0].mxu0 %vm508_vm0, %v499_v27  ;;  %3054 = vmatpush1.bf16.msra.mxu1 %v4211_v26  ;;  %v4240_v46 = vpack.c.bf16 %v608_v44, %v606_v43  ;;  %v607_v48 = vld [vmem:[#allocation9 + $0xb0] sm:$0xff]  ;;  %v610_v49 = vld [vmem:[#allocation9 + $0xc8] sm:$0xff]  ;;  %v612_v50 = vld [vmem:[#allocation9 + $0xd8] sm:$0xff] }
  0xcb   : > { %3114 = vmatpush1.bf16.msra.mxu0 %v4205_v20  ;;  %3056 = vmatprep.subr.bf16.mxu1 %v4215_v28  ;;  %v4244_v51 = vpack.c.bf16 %v607_v48, %v605_v47  ;;  %v4248_v52 = vpack.c.bf16 %v612_v50, %v610_v49  ;;  %v609_v53 = vld [vmem:[#allocation9 + $0xc0] sm:$0xff]  ;;  %v611_v54 = vld [vmem:[#allocation9 + $0xd0] sm:$0xff]  ;;  %v614_v55 = vld [vmem:[#allocation9 + $0xe8] sm:$0xff] }
  0xcc   : > { %3116 = vmatprep.subr.bf16.mxu0 %v4207_v21  ;;  %v616_v56 = vld [vmem:[#allocation9 + $0xf8] sm:$0xff]  ;;  %v4252_v57 = vpack.c.bf16 %v611_v54, %v609_v53  ;;  %v613_v59 = vld [vmem:[#allocation9 + $0xe0] sm:$0xff]  ;;  %v615_v60 = vld [vmem:[#allocation9 + $0xf0] sm:$0xff] }
  0xcd   : > { %v4256_v58 = vpack.c.bf16 %v616_v56, %v614_v55  ;;  %v618_v61 = vld [vmem:[#allocation9 + $0x108] sm:$0xff]  ;;  %v620_v62 = vld [vmem:[#allocation9 + $0x118] sm:$0xff]  ;;  %v4260_v63 = vpack.c.bf16 %v615_v60, %v613_v59  ;;  %v617_v2 = vld [vmem:[#allocation9 + $0x100] sm:$0xff] }
  0xce   : > { %3058 = vmatpush1.bf16.msra.mxu1 %v4220_v33  ;;  %v4264_v1 = vpack.c.bf16 %v620_v62, %v618_v61  ;;  %v619_v3 = vld [vmem:[#allocation9 + $0x110] sm:$0xff]  ;;  %v622_v4 = vld [vmem:[#allocation9 + $0x128] sm:$0xff]  ;;  %v624_v5 = vld [vmem:[#allocation9 + $0x138] sm:$0xff]  ;;  %v651_v62 = vlaneseq }
  0xcf   : > { %3118 = vmatpush1.bf16.msra.mxu0 %v4211_v26  ;;  %3060 = vmatprep.subr.bf16.mxu1 %v4224_v34  ;;  %v4268_v6 = vpack.c.bf16 %v619_v3, %v617_v2  ;;  %v4272_v7 = vpack.c.bf16 %v624_v5, %v622_v4  ;;  %v621_v8 = vld [vmem:[#allocation9 + $0x120] sm:$0xff]  ;;  %v623_v9 = vld [vmem:[#allocation9 + $0x130] sm:$0xff]  ;;  %v626_v10 = vld [vmem:[#allocation9 + $0x148] sm:$0xff] }
  0xd0   : > { %3120 = vmatprep.subr.bf16.mxu0 %v4215_v28  ;;  %v628_v11 = vld [vmem:[#allocation9 + $0x158] sm:$0xff]  ;;  %v4276_v12 = vpack.c.bf16 %v623_v9, %v621_v8  ;;  %v625_v14 = vld [vmem:[#allocation9 + $0x140] sm:$0xff]  ;;  %v627_v15 = vld [vmem:[#allocation9 + $0x150] sm:$0xff]  ;;  %v4336_v2 = vshrl.u32 %v651_v62, 7 }
  0xd1   : > { %v4280_v13 = vpack.c.bf16 %v628_v11, %v626_v10  ;;  %v630_v17 = vld [vmem:[#allocation9 + $0x168] sm:$0xff]  ;;  %v632_v18 = vld [vmem:[#allocation9 + $0x178] sm:$0xff]  ;;  %v4284_v19 = vpack.c.bf16 %v627_v15, %v625_v14  ;;  %v629_v23 = vld [vmem:[#allocation9 + $0x160] sm:$0xff] }
  0xd2   : > { %3062 = vmatpush1.bf16.msra.mxu1 %v4228_v39  ;;  %v4288_v22 = vpack.c.bf16 %v632_v18, %v630_v17  ;;  %v631_v24 = vld [vmem:[#allocation9 + $0x170] sm:$0xff]  ;;  %v634_v25 = vld [vmem:[#allocation9 + $0x188] sm:$0xff]  ;;  %v636_v27 = vld [vmem:[#allocation9 + $0x198] sm:$0xff]  ;;  %v4339_v3 = vsub.s32 0, %v4336_v2  ;;  %v4342_v4 = vsub.s32 1, %v4336_v2  ;;  %v4345_v5 = vsub.s32 2, %v4336_v2 }
  0xd3   : > { %3122 = vmatpush1.bf16.msra.mxu0 %v4220_v33  ;;  %3064 = vmatprep.subr.bf16.mxu1 %v4232_v40  ;;  %v4292_v29 = vpack.c.bf16 %v631_v24, %v629_v23  ;;  %v4296_v30 = vpack.c.bf16 %v636_v27, %v634_v25  ;;  %v633_v31 = vld [vmem:[#allocation9 + $0x180] sm:$0xff]  ;;  %v635_v32 = vld [vmem:[#allocation9 + $0x190] sm:$0xff]  ;;  %v638_v35 = vld [vmem:[#allocation9 + $0x1a8] sm:$0xff]  ;;  %v4348_v8 = vsub.s32 3, %v4336_v2 }
  0xd4   : > { %3124 = vmatprep.subr.bf16.mxu0 %v4224_v34  ;;  %v640_v36 = vld [vmem:[#allocation9 + $0x1b8] sm:$0xff]  ;;  %v4300_v37 = vpack.c.bf16 %v635_v32, %v633_v31  ;;  %v637_v41 = vld [vmem:[#allocation9 + $0x1a0] sm:$0xff]  ;;  %v639_v42 = vld [vmem:[#allocation9 + $0x1b0] sm:$0xff] }
  0xd5   : > { %v4304_v38 = vpack.c.bf16 %v640_v36, %v638_v35  ;;  %v642_v43 = vld [vmem:[#allocation9 + $0x1c8] sm:$0xff]  ;;  %v644_v44 = vld [vmem:[#allocation9 + $0x1d8] sm:$0xff]  ;;  %v4308_v47 = vpack.c.bf16 %v639_v42, %v637_v41  ;;  %v641_v49 = vld [vmem:[#allocation9 + $0x1c0] sm:$0xff] }
  0xd6   : > { %3066 = vmatpush1.bf16.msra.mxu1 %v4236_v45  ;;  %v4312_v48 = vpack.c.bf16 %v644_v44, %v642_v43  ;;  %v643_v50 = vld [vmem:[#allocation9 + $0x1d0] sm:$0xff]  ;;  %v646_v54 = vld [vmem:[#allocation9 + $0x1e8] sm:$0xff]  ;;  %v648_v55 = vld [vmem:[#allocation9 + $0x1f8] sm:$0xff] }
  0xd7   : > { %3126 = vmatpush1.bf16.msra.mxu0 %v4228_v39  ;;  %3068 = vmatprep.subr.bf16.mxu1 %v4240_v46  ;;  %v4316_v53 = vpack.c.bf16 %v643_v50, %v641_v49  ;;  %v4325_v56 = vpack.c.bf16 %v648_v55, %v646_v54  ;;  %v645_v59 = vld [vmem:[#allocation9 + $0x1e0] sm:$0xff]  ;;  %v647_v60 = vld [vmem:[#allocation9 + $0x1f0] sm:$0xff]  ;;  %v584_v18 = vld [vmem:[#allocation8 + $0x8] sm:$0xff] }
  0xd8   : > { %3128 = vmatprep.subr.bf16.mxu0 %v4232_v40  ;;  %v4327_v61 = vpack.c.bf16 %v647_v60, %v645_v59  ;;  %v583_v10 = vld [vmem:[#allocation8] sm:$0xff] }
  0xda   : > { %3070 = vmatpush1.bf16.msra.mxu1 %v4244_v51 }
  0xdb   : > { %3130 = vmatpush1.bf16.msra.mxu0 %v4236_v45  ;;  %3072 = vmatprep.subr.bf16.mxu1 %v4248_v52 }
  0xdc   : > { %3132 = vmatprep.subr.bf16.mxu0 %v4240_v46 }
  0xde   : > { %3074 = vmatpush1.bf16.msra.mxu1 %v4252_v57 }
  0xdf   : > { %3134 = vmatpush1.bf16.msra.mxu0 %v4244_v51  ;;  %3076 = vmatprep.subr.bf16.mxu1 %v4256_v58 }
  0xe0   : > { %3136 = vmatprep.subr.bf16.mxu0 %v4248_v52 }
  0xe2   : > { %3078 = vmatpush1.bf16.msra.mxu1 %v4260_v63 }
  0xe3   : > { %3138 = vmatpush1.bf16.msra.mxu0 %v4252_v57  ;;  %3080 = vmatprep.subr.bf16.mxu1 %v4264_v1 }
  0xe4   : > { %3140 = vmatprep.subr.bf16.mxu0 %v4256_v58 }
  0xe6   : > { %3082 = vmatpush1.bf16.msra.mxu1 %v4268_v6 }
  0xe7   : > { %3142 = vmatpush1.bf16.msra.mxu0 %v4260_v63  ;;  %3084 = vmatprep.subr.bf16.mxu1 %v4272_v7 }
  0xe8   : > { %3144 = vmatprep.subr.bf16.mxu0 %v4264_v1 }
  0xea   : > { %3086 = vmatpush1.bf16.msra.mxu1 %v4276_v12 }
  0xeb   : > { %3146 = vmatpush1.bf16.msra.mxu0 %v4268_v6  ;;  %3088 = vmatprep.subr.bf16.mxu1 %v4280_v13 }
  0xec   : > { %3148 = vmatprep.subr.bf16.mxu0 %v4272_v7 }
  0xee   : > { %3090 = vmatpush1.bf16.msra.mxu1 %v4284_v19 }
  0xef   : > { %3150 = vmatpush1.bf16.msra.mxu0 %v4276_v12  ;;  %3092 = vmatprep.subr.bf16.mxu1 %v4288_v22 }
  0xf0   : > { %3152 = vmatprep.subr.bf16.mxu0 %v4280_v13 }
  0xf2   : > { %3094 = vmatpush1.bf16.msra.mxu1 %v4292_v29 }
  0xf3   : > { %3154 = vmatpush1.bf16.msra.mxu0 %v4284_v19  ;;  %3096 = vmatprep.subr.bf16.mxu1 %v4296_v30 }
  0xf4   : > { %3156 = vmatprep.subr.bf16.mxu0 %v4288_v22 }
  0xf6   : > { %3098 = vmatpush1.bf16.msra.mxu1 %v4300_v37 }
  0xf7   : > { %3158 = vmatpush1.bf16.msra.mxu0 %v4292_v29  ;;  %3100 = vmatprep.subr.bf16.mxu1 %v4304_v38 }
  0xf8   : > { %3160 = vmatprep.subr.bf16.mxu0 %v4296_v30 }
  0xfa   : > { %3102 = vmatpush1.bf16.msra.mxu1 %v4308_v47 }
  0xfb   : > { %3162 = vmatpush1.bf16.msra.mxu0 %v4300_v37  ;;  %3104 = vmatprep.subr.bf16.mxu1 %v4312_v48 }
  0xfc   : > { %3164 = vmatprep.subr.bf16.mxu0 %v4304_v38 }
  0xfe   : > { %3106 = vmatpush1.bf16.msra.mxu1 %v4316_v53 }
  0xff   : > { %3166 = vmatpush1.bf16.msra.mxu0 %v4308_v47  ;;  %3108 = vmatprep.subr.bf16.mxu1 %v4325_v56 }
 0x100   : > { %3168 = vmatprep.subr.bf16.mxu0 %v4312_v48 }
 0x102   : > { %3110 = vmatpush1.bf16.msra.mxu1 %v4327_v61 }
 0x103   : > { %3170 = vmatpush1.bf16.msra.mxu0 %v4316_v53  ;;  %3176 = vmatprep.subr.bf16.mxu1 %v4203_v16 }
 0x104   : > { %3172 = vmatprep.subr.bf16.mxu0 %v4325_v56 }
 0x107   : > { %3174 = vmatpush1.bf16.msra.mxu0 %v4327_v61 }
 0x108   : > { %3240 = vmatprep.subr.bf16.mxu0 %v4203_v16 }
 0x19d   : > { %v578_v9 = vpop.f32.mrb[0].mxu0 }
 0x19e   : > { %v654_v16 = vrot.slane %v578_v9, %v4339_v3  ;;  %v737_v11 = vrot.slane %v578_v9, %v4342_v4  ;;  %v820_v14 = vrot.slane %v578_v9, %v4345_v5  ;;  %v903_v15 = vrot.slane %v578_v9, %v4348_v8  ;;  %v580_v17 = vpop.f32.mrb[1].mxu0  ;;  %v2979_v9 = vld [vmem:[%s5403_s7 + $0x1] ss:$8 sm:$0xf] }
 0x19f   : > { %v741_v23 = vrot.slane %v580_v17, %v4342_v4  ;;  %v658_v24 = vrot.slane %v580_v17, %v4339_v3  ;;  %v824_v25 = vrot.slane %v580_v17, %v4345_v5  ;;  %v907_v27 = vrot.slane %v580_v17, %v4348_v8 }
 0x1a0   : > { %v4358_v31 = vmul.f32 %v820_v14, %v583_v10  ;;  %v4360_v32 = vmul.f32 %v903_v15, %v583_v10  ;;  %v659_v41 = vmul.f32 %v654_v16, %v583_v10  ;;  %v742_v42 = vmul.f32 %v737_v11, %v583_v10  ;;  %v2980_v10 = vld [vmem:[%s5403_s7 + $0x1] ss:$8 sm:$0xf0]  ;;  %v1010_v16 = vld [vmem:[%s5403_s7] ss:$8 sm:$0xf] }
 0x1a1   : > { %v660_v35 = vmul.f32 %v658_v24, %v584_v18  ;;  %v743_v36 = vmul.f32 %v741_v23, %v584_v18  ;;  %v826_v43 = vmul.f32 %v824_v25, %v584_v18  ;;  %v909_v44 = vmul.f32 %v907_v27, %v584_v18  ;;  %v1011_v11 = vld [vmem:[%s5403_s7] ss:$8 sm:$0xf0] }
 0x1a2   : > { %v4603_v14 = vand.u32 127, %v651_v62  ;;  %v4609_v18 = vor.u32 %v2980_v10, %v2979_v9  ;;  %v4615_v23 = vor.u32 %v1011_v11, %v1010_v16  ;;  %v2989_v11 = vld [vmem:[%s5403_s7 + $0x7] ss:$8 sm:$0xf] }
 0x1a3   : > { %725 = vmatprep.mubr.f32.mxu1 %v660_v35  ;;  %808 = vmatprep.mubr.f32.mxu0 %v743_v36 }
 0x1a4   : > { %726 = vmatmul.mubr.f32.vlgmr.msra.gmra.mrb[0].mxu1 %v659_v41  ;;  %809 = vmatmul.mubr.f32.vlgmr.msra.gmra.mrb[2].mxu0 %v742_v42  ;;  %vm1086_vm1 = vcmp.lt.s32.totalorder %v4603_v14, 16  ;;  %v1107_v62 = vrot.slane %v4609_v18, %v4342_v4  ;;  %vm1001_vm2 = vcmp.lt.s32.totalorder %v4603_v14, 17  ;;  %v1021_v27 = vrot.slane %v4615_v23, %v4342_v4 }
 0x1a5   : > { %3178 = vmatpush1.bf16.msra.mxu1 %v4205_v20  ;;  %3242 = vmatpush1.bf16.msra.mxu0 %v4205_v20  ;;  %v649_v20 = vld [vmem:[#allocation11] sm:$0xff]  ;;  %vm1258_vm3 = vcmp.lt.s32.totalorder %v4603_v14, 1  ;;  %vm1172_vm4 = vcmp.lt.s32.totalorder %v4603_v14, 15  ;;  %vm1352_vm5 = vcmp.lt.s32.totalorder %v4603_v14, 127  ;;  %vm1438_vm6 = vcmp.lt.s32.totalorder %v4603_v14, 113 }
 0x1a6   : > { %891 = vmatprep.mubr.f32.mxu1 %v826_v43  ;;  %974 = vmatprep.mubr.f32.mxu0 %v909_v44  ;;  %vm1524_vm7 = vcmp.lt.s32.totalorder %v4603_v14, 112  ;;  %vm1610_vm8 = vcmp.lt.s32.totalorder %v4603_v14, 111 }
 0x1a7   : > { %3180 = vmatprep.subr.bf16.mxu1 %v4207_v21  ;;  %3244 = vmatprep.subr.bf16.mxu0 %v4207_v21 }
 0x1a9   : > { %3182 = vmatpush1.bf16.msra.mxu1 %v4211_v26  ;;  %3246 = vmatpush1.bf16.msra.mxu0 %v4211_v26 }
 0x1aa   : > { %3184 = vmatprep.subr.bf16.mxu1 %v4215_v28  ;;  %3248 = vmatprep.subr.bf16.mxu0 %v4215_v28 }
 0x1ad   : > { %3186 = vmatpush1.bf16.msra.mxu1 %v4220_v33  ;;  %3250 = vmatpush1.bf16.msra.mxu0 %v4220_v33 }
 0x1ae   : > { %3188 = vmatprep.subr.bf16.mxu1 %v4224_v34  ;;  %3252 = vmatprep.subr.bf16.mxu0 %v4224_v34 }
 0x1b1   : > { %3190 = vmatpush1.bf16.msra.mxu1 %v4228_v39  ;;  %3254 = vmatpush1.bf16.msra.mxu0 %v4228_v39 }
 0x1b2   : > { %3192 = vmatprep.subr.bf16.mxu1 %v4232_v40  ;;  %3256 = vmatprep.subr.bf16.mxu0 %v4232_v40 }
 0x1b5   : > { %3194 = vmatpush1.bf16.msra.mxu1 %v4236_v45  ;;  %3258 = vmatpush1.bf16.msra.mxu0 %v4236_v45 }
 0x1b6   : > { %3196 = vmatprep.subr.bf16.mxu1 %v4240_v46  ;;  %3260 = vmatprep.subr.bf16.mxu0 %v4240_v46  ;;  %v650_v46 = vld [vmem:[#allocation11 + $0x8] sm:$0xff] }
 0x1b9   : > { %3198 = vmatpush1.bf16.msra.mxu1 %v4244_v51  ;;  %3262 = vmatpush1.bf16.msra.mxu0 %v4244_v51 }
 0x1ba   : > { %3200 = vmatprep.subr.bf16.mxu1 %v4248_v52  ;;  %3264 = vmatprep.subr.bf16.mxu0 %v4248_v52 }
 0x1bd   : > { %3202 = vmatpush1.bf16.msra.mxu1 %v4252_v57  ;;  %3266 = vmatpush1.bf16.msra.mxu0 %v4252_v57 }
 0x1be   : > { %3204 = vmatprep.subr.bf16.mxu1 %v4256_v58  ;;  %3268 = vmatprep.subr.bf16.mxu0 %v4256_v58 }
 0x1c1   : > { %3206 = vmatpush1.bf16.msra.mxu1 %v4260_v63  ;;  %3270 = vmatpush1.bf16.msra.mxu0 %v4260_v63 }
 0x1c2   : > { %3208 = vmatprep.subr.bf16.mxu1 %v4264_v1  ;;  %3272 = vmatprep.subr.bf16.mxu0 %v4264_v1 }
 0x1c5   : > { %3210 = vmatpush1.bf16.msra.mxu1 %v4268_v6  ;;  %3274 = vmatpush1.bf16.msra.mxu0 %v4268_v6 }
 0x1c6   : > { %3212 = vmatprep.subr.bf16.mxu1 %v4272_v7  ;;  %3276 = vmatprep.subr.bf16.mxu0 %v4272_v7 }
 0x1c9   : > { %3214 = vmatpush1.bf16.msra.mxu1 %v4276_v12  ;;  %3278 = vmatpush1.bf16.msra.mxu0 %v4276_v12 }
 0x1ca   : > { %3216 = vmatprep.subr.bf16.mxu1 %v4280_v13  ;;  %3280 = vmatprep.subr.bf16.mxu0 %v4280_v13 }
 0x1cd   : > { %3218 = vmatpush1.bf16.msra.mxu1 %v4284_v19  ;;  %3282 = vmatpush1.bf16.msra.mxu0 %v4284_v19 }
 0x1ce   : > { %3220 = vmatprep.subr.bf16.mxu1 %v4288_v22  ;;  %3284 = vmatprep.subr.bf16.mxu0 %v4288_v22 }
 0x1d1   : > { %3222 = vmatpush1.bf16.msra.mxu1 %v4292_v29  ;;  %3286 = vmatpush1.bf16.msra.mxu0 %v4292_v29 }
 0x1d2   : > { %3224 = vmatprep.subr.bf16.mxu1 %v4296_v30  ;;  %3288 = vmatprep.subr.bf16.mxu0 %v4296_v30 }
 0x1d5   : > { %3226 = vmatpush1.bf16.msra.mxu1 %v4300_v37  ;;  %3290 = vmatpush1.bf16.msra.mxu0 %v4300_v37 }
 0x1d6   : > { %3228 = vmatprep.subr.bf16.mxu1 %v4304_v38  ;;  %3292 = vmatprep.subr.bf16.mxu0 %v4304_v38 }
 0x1d9   : > { %3230 = vmatpush1.bf16.msra.mxu1 %v4308_v47  ;;  %3294 = vmatpush1.bf16.msra.mxu0 %v4308_v47 }
 0x1da   : > { %3232 = vmatprep.subr.bf16.mxu1 %v4312_v48  ;;  %3296 = vmatprep.subr.bf16.mxu0 %v4312_v48 }
 0x1dd   : > { %3234 = vmatpush1.bf16.msra.mxu1 %v4316_v53  ;;  %3298 = vmatpush1.bf16.msra.mxu0 %v4316_v53 }
 0x1de   : > { %3236 = vmatprep.subr.bf16.mxu1 %v4325_v56  ;;  %3300 = vmatprep.subr.bf16.mxu0 %v4325_v56 }
 0x1e1   : > { %3238 = vmatpush1.bf16.msra.mxu1 %v4327_v61  ;;  %3302 = vmatpush1.bf16.msra.mxu0 %v4327_v61 }
 0x1e4   : > { %892 = vmatmul.mubr.f32.vlgmr.msra.gmra.mrb[2].mxu1 %v4358_v31  ;;  %975 = vmatmul.mubr.f32.vlgmr.msra.gmra.mrb[4].mxu0 %v4360_v32 }
 0x1e5   : > { %1827 = vmatprep.mubr.f32.mxu1 %v5415_v0  ;;  %1898 = vmatprep.mubr.f32.mxu0 %v5415_v0 }
 0x277   : > { %v727_v21 = vpop.f32.mrb[0].mxu1  ;;  %v810_v26 = vpop.f32.mrb[2].mxu0 }
 0x278   : > { %v728_v28 = vadd.f32 %v727_v21, %v649_v20  ;;  %v729_v33 = vpop.f32.mrb[1].mxu1  ;;  %v812_v34 = vpop.f32.mrb[3].mxu0  ;;  %v811_v40 = vadd.f32 %v810_v26, %v649_v20 }
 0x279   : > { %v730_v51 = vadd.f32 %v729_v33, %v650_v46  ;;  %v813_v57 = vadd.f32 %v812_v34, %v650_v46 }
 0x27a   : > { %v4428_v39 = vmax.f32 %v728_v28, 0.0  ;;  %v4434_v45 = vmax.f32 %v811_v40, 0.0  ;;  %v2983_v40 = vld [vmem:[%s5403_s7 + $0x3] ss:$8 sm:$0xf] }
 0x27b   : > { %v4448_v52 = vmax.f32 %v730_v51, 0.0  ;;  %v4474_v58 = vmax.f32 %v813_v57, 0.0  ;;  %v2981_v51 = vld [vmem:[%s5403_s7 + $0x2] ss:$8 sm:$0xf] }
 0x27c   : > { %1070 = vrot.lane.b32.xlu1 %v4428_v39, %s3865_s28  ;;  %983 = vrot.lane.b32.xlu0 %v4428_v39, %s3866_s20  ;;  %v2982_v57 = vld [vmem:[%s5403_s7 + $0x2] ss:$8 sm:$0xf0] }
 0x27d   : > { %5447 = vst [vmem:[#allocation20_spill] sm:$0xff] %v4474_v58 }
 0x280   : > { %1340 = vrot.lane.b32.xlu1 %v4434_v45, %s3867_s11  ;;  %1156 = vrot.lane.b32.xlu0 %v4428_v39, %s3868_s6 }
 0x284   : > { %1422 = vrot.lane.b32.xlu1 %v4428_v39, %s5414_s13  ;;  %1242 = vrot.lane.b32.xlu0 %v4428_v39, %s3870_s10 }
 0x288   : > { %1594 = vrot.lane.b32.xlu1 %v4428_v39, %s3871_s16  ;;  %1336 = vrot.lane.b32.xlu0 %v4428_v39, %s3867_s11 }
 0x28c   : > { %1072 = vrot.lane.b32.xlu1 %v4448_v52, %s3865_s28  ;;  %1426 = vrot.lane.b32.xlu0 %v4434_v45, %s5414_s13 }
 0x290   : > { %1158 = vrot.lane.b32.xlu1 %v4448_v52, %s3868_s6  ;;  %1512 = vrot.lane.b32.xlu0 %v4434_v45, %s3872_s14 }
 0x294   : > { %1244 = vrot.lane.b32.xlu1 %v4448_v52, %s3870_s10  ;;  %1508 = vrot.lane.b32.xlu0 %v4428_v39, %s3872_s14 }
 0x298   : > { %1424 = vrot.lane.b32.xlu1 %v4448_v52, %s5414_s13  ;;  %1598 = vrot.lane.b32.xlu0 %v4434_v45, %s3871_s16 }
 0x29c   : > { %1510 = vrot.lane.b32.xlu1 %v4448_v52, %s3872_s14  ;;  %985 = vrot.lane.b32.xlu0 %v4448_v52, %s3866_s20 }
 0x2a0   : > { %1596 = vrot.lane.b32.xlu1 %v4448_v52, %s3871_s16  ;;  %1338 = vrot.lane.b32.xlu0 %v4448_v52, %s3867_s11 }
 0x2a4   : > { %989 = vrot.lane.b32.xlu1 %v4474_v58, %s3866_s20  ;;  %1076 = vrot.lane.b32.xlu0 %v4474_v58, %s3865_s28 }
 0x2a8   : > { %1248 = vrot.lane.b32.xlu1 %v4474_v58, %s3870_s10  ;;  %1162 = vrot.lane.b32.xlu0 %v4474_v58, %s3868_s6 }
 0x2b7   : > { %v893_v63 = vpop.f32.mrb[2].mxu1  ;;  %v976_v1 = vpop.f32.mrb[4].mxu0 }
 0x2b8   : > { %v894_v6 = vadd.f32 %v893_v63, %v649_v20  ;;  %v977_v7 = vadd.f32 %v976_v1, %v649_v20  ;;  %v895_v12 = vpop.f32.mrb[3].mxu1  ;;  %v978_v13 = vpop.f32.mrb[5].mxu0 }
 0x2b9   : > { %v896_v19 = vadd.f32 %v895_v12, %v650_v46  ;;  %v979_v29 = vadd.f32 %v978_v13, %v650_v46  ;;  %v2984_v46 = vld [vmem:[%s5403_s7 + $0x3] ss:$8 sm:$0xf0]  ;;  %v2986_v12 = vld [vmem:[%s5403_s7 + $0x5] ss:$8 sm:$0xf0]  ;;  %v4675_v13 = vor.u32 %v2982_v57, %v2981_v51 }
 0x2ba   : > { %v4484_v22 = vmax.f32 %v894_v6, 0.0  ;;  %v4504_v37 = vmax.f32 %v977_v7, 0.0  ;;  %v4663_v63 = vor.u32 %v2984_v46, %v2983_v40  ;;  %v2985_v7 = vld [vmem:[%s5403_s7 + $0x5] ss:$8 sm:$0xf] }
 0x2bb   : > { %v4494_v30 = vmax.f32 %v979_v29, 0.0  ;;  %v4510_v38 = vmax.f32 %v896_v19, 0.0  ;;  %v4681_v29 = vor.u32 %v2986_v12, %v2985_v7  ;;  %v2988_v40 = vld [vmem:[%s5403_s7 + $0x6] ss:$8 sm:$0xf0] }
 0x2bc   : > { %991 = vrot.lane.b32.xlu1 %v4484_v22, %s3866_s20  ;;  %1164 = vrot.lane.b32.xlu0 %v4484_v22, %s3868_s6  ;;  %5449 = vst [vmem:[#allocation22_spill] sm:$0xff] %v4504_v37  ;;  %v1279_v19 = vrot.slane %v4663_v63, %v4342_v4 }
 0x2bd   : > { %5448 = vst [vmem:[#allocation21_spill] sm:$0xff] %v4494_v30  ;;  %v1373_v51 = vrot.slane %v4681_v29, %v4342_v4 }
 0x2c0   : > { %1078 = vrot.lane.b32.xlu1 %v4484_v22, %s3865_s28  ;;  %1250 = vrot.lane.b32.xlu0 %v4484_v22, %s3870_s10 }
 0x2c4   : > { %1084 = vrot.lane.b32.xlu1 %v4494_v30, %s3865_s28  ;;  %997 = vrot.lane.b32.xlu0 %v4494_v30, %s3866_s20 }
 0x2c8   : > { %1256 = vrot.lane.b32.xlu1 %v4494_v30, %s3870_s10  ;;  %1170 = vrot.lane.b32.xlu0 %v4494_v30, %s3868_s6 }
 0x2cc   : > { %1348 = vrot.lane.b32.xlu1 %v4504_v37, %s3867_s11  ;;  %1344 = vrot.lane.b32.xlu0 %v4484_v22, %s3867_s11 }
 0x2d0   : > { %1166 = vrot.lane.b32.xlu1 %v4510_v38, %s3868_s6  ;;  %993 = vrot.lane.b32.xlu0 %v4510_v38, %s3866_s20 }
 0x2d4   : > { %1252 = vrot.lane.b32.xlu1 %v4510_v38, %s3870_s10  ;;  %1080 = vrot.lane.b32.xlu0 %v4510_v38, %s3865_s28 }
 0x2d8   : > { %1430 = vrot.lane.b32.xlu1 %v4484_v22, %s5414_s13  ;;  %1434 = vrot.lane.b32.xlu0 %v4504_v37, %s5414_s13 }
 0x2dc   : > { %1432 = vrot.lane.b32.xlu1 %v4510_v38, %s5414_s13  ;;  %1346 = vrot.lane.b32.xlu0 %v4510_v38, %s3867_s11 }
 0x2e0   : > { %1518 = vrot.lane.b32.xlu1 %v4510_v38, %s3872_s14  ;;  %1520 = vrot.lane.b32.xlu0 %v4504_v37, %s3872_s14 }
 0x2e4   : > { %1604 = vrot.lane.b32.xlu1 %v4510_v38, %s3871_s16  ;;  %1516 = vrot.lane.b32.xlu0 %v4484_v22, %s3872_s14 }
 0x2e8   : > { %1602 = vrot.lane.b32.xlu1 %v4484_v22, %s3871_s16  ;;  %1606 = vrot.lane.b32.xlu0 %v4504_v37, %s3871_s16 }
 0x2ec   : > { %1074 = vrot.lane.b32.xlu1 %v4434_v45, %s3865_s28  ;;  %987 = vrot.lane.b32.xlu0 %v4434_v45, %s3866_s20 }
 0x2ee   : > { %v4544_v47 = vpop.permute.xlu1 %1070  ;;  %v4546_v48 = vpop.permute.xlu0 %983 }
 0x2f0   : > { %1246 = vrot.lane.b32.xlu1 %v4434_v45, %s3870_s10  ;;  %1160 = vrot.lane.b32.xlu0 %v4434_v45, %s3868_s6 }
 0x2f2   : > { %v4552_v49 = vpop.permute.xlu1 %1340  ;;  %v4554_v50 = vpop.permute.xlu0 %1156 }
 0x2f4   : > { %1428 = vrot.lane.b32.xlu1 %v4474_v58, %s5414_s13  ;;  %1342 = vrot.lane.b32.xlu0 %v4474_v58, %s3867_s11 }
 0x2f6   : > { %v4560_v53 = vpop.permute.xlu1 %1422  ;;  %v4562_v54 = vpop.permute.xlu0 %1242 }
 0x2f7   : > { %5450 = vst [vmem:[#allocation23_spill] sm:$0xff] %v4560_v53 }
 0x2f8   : > { %995 = vrot.lane.b32.xlu1 %v4504_v37, %s3866_s20  ;;  %1514 = vrot.lane.b32.xlu0 %v4474_v58, %s3872_s14  ;;  %s3015_s20 = sshll.u32 %s3964_s27, 9  ;;  %s3877_s27 = smov [#allocation14]  }
 0x2f9   : > { %s3780_s26 = sshll.u32 %s3877_s27, 4  ;;  %s3781_s26 = int_to_ptr.vmem [resolvable:$false] %s3780_s26 }
 0x2fa   : > { %v4568_v55 = vpop.permute.xlu1 %1594  ;;  %v4570_v56 = vpop.permute.xlu0 %1336 }
 0x2fb   : > { %5451 = vst [vmem:[#allocation24_spill] sm:$0xff] %v4568_v55  ;;  %5452 = vst [vmem:[#allocation25_spill] sm:$0xff] %v4570_v56 }
 0x2fc   : > { %1600 = vrot.lane.b32.xlu1 %v4474_v58, %s3871_s16  ;;  %1082 = vrot.lane.b32.xlu0 %v4504_v37, %s3865_s28 }
 0x2fe   : > { %v4576_v59 = vpop.permute.xlu0 %1426  ;;  %v4578_v60 = vpop.permute.xlu1 %1072 }
 0x2ff   : > { %v1093_v31 = vsel %vm1086_vm1, %v4544_v47, %v4578_v60 }
 0x300   : > { %1254 = vrot.lane.b32.xlu1 %v4504_v37, %s3870_s10  ;;  %1168 = vrot.lane.b32.xlu0 %v4504_v37, %s3868_s6  ;;  %v1141_v36 = vmul.f32 %v1107_v62, %v1093_v31  ;;  %v2990_v62 = vld [vmem:[%s5403_s7 + $0x7] ss:$8 sm:$0xf0]  ;;  %v1103_v31 = vrot.slane %v4609_v18, %v4339_v3  ;;  %s5469_s6 = sld [smem:[#allocation30_spill]] }
 0x301   : > { %v4714_v46 = vor.u32 %v2990_v62, %v2989_v11  ;;  %v1189_v11 = vrot.slane %v4675_v13, %v4339_v3 }
 0x302   : > { %v4584_v61 = vpop.permute.xlu0 %1512  ;;  %v4605_v15 = vpop.permute.xlu1 %1158 }
 0x304   : > { %1522 = vrot.lane.b32.xlu1 %v4494_v30, %s3872_s14  ;;  %1350 = vrot.lane.b32.xlu0 %v4494_v30, %s3867_s11  ;;  %s5454_s11 = smov 113  }
 0x306   : > { %v4607_v17 = vpop.permute.xlu0 %1508  ;;  %v4622_v25 = vpop.permute.xlu1 %1244 }
 0x307   : > { %5453 = vst [vmem:[#allocation26_spill] sm:$0xff] %v4607_v17  ;;  %v1265_v16 = vsel %vm1258_vm3, %v4562_v54, %v4622_v25 }
 0x308   : > { %1608 = vrot.lane.b32.xlu1 %v4494_v30, %s3871_s16  ;;  %1436 = vrot.lane.b32.xlu0 %v4494_v30, %s5454_s11  ;;  %s5470_s16 = sld [smem:[#allocation32_spill]]  ;;  %s5472_s11 = sld [smem:[#allocation33_spill]] }
 0x30a   : > { %v4618_v24 = vpop.permute.xlu0 %1598  ;;  %v4637_v42 = vpop.permute.xlu1 %1424 }
 0x30e   : > { %v4631_v32 = vpop.permute.xlu0 %985  ;;  %v4639_v44 = vpop.permute.xlu1 %1510  ;;  %s5351_s13 = scalar_lea.hbm %s5472_s11, %s3015_s20 }
 0x30f   : > { %v1008_v35 = vsel %vm1001_vm2, %v4546_v48, %v4631_v32 }
 0x310   : > { %v1055_v41 = vmul.f32 %v1021_v27, %v1008_v35  ;;  %v1193_v27 = vrot.slane %v4675_v13, %v4342_v4  ;;  %v1017_v35 = vrot.slane %v4615_v23, %v4339_v3 }
 0x312   : > { %v3303_v43 = vpack.c.bf16 %v1141_v36, %v1055_v41  ;;  %v4641_v20 = vpop.permute.xlu1 %1596  ;;  %v1339_v21 = vpop.permute.xlu0 %1338  ;;  %v1179_v36 = vsel %vm1172_vm4, %v4554_v50, %v4605_v15  ;;  %v1313_v41 = vmul.f32 %v1279_v19, %v1265_v16  ;;  %v1275_v16 = vrot.slane %v4663_v63, %v4339_v3 }
 0x313   : > { %v1227_v62 = vmul.f32 %v1193_v27, %v1179_v36  ;;  %v1358_v0 = vsel %vm1352_vm5, %v1339_v21, %v4552_v49 }
 0x314   : > { %3304 = vmatprep.subr.bf16.mxu1 %v3303_v43  ;;  %v2987_v43 = vld [vmem:[%s5403_s7 + $0x6] ss:$8 sm:$0xf] }
 0x315   : > { %v3307_v58 = vpack.c.bf16 %v1313_v41, %v1227_v62 }
 0x316   : > { %v4643_v26 = vpop.permute.xlu1 %989  ;;  %v4645_v28 = vpop.permute.xlu0 %1076 }
 0x31a   : > { %v4647_v33 = vpop.permute.xlu1 %1248  ;;  %v4649_v34 = vpop.permute.xlu0 %1162 }
 0x32e   : > { %v4665_v1 = vpop.permute.xlu1 %991  ;;  %v4667_v6 = vpop.permute.xlu0 %1164 }
 0x332   : > { %v4683_v9 = vpop.permute.xlu1 %1078  ;;  %v4685_v10 = vpop.permute.xlu0 %1250 }
 0x336   : > { %v4718_v57 = vpop.permute.xlu1 %1084  ;;  %v4720_v7 = vpop.permute.xlu0 %997 }
 0x337   : > { %5455 = vst [vmem:[#allocation27_spill] sm:$0xff] %v4718_v57  ;;  %5456 = vst [vmem:[#allocation28_spill] sm:$0xff] %v4720_v7  ;;  %v1094_v12 = vsel %vm1086_vm1, %v4718_v57, %v4544_v47  ;;  %v1009_v19 = vsel %vm1001_vm2, %v4720_v7, %v4546_v48  ;;  %v4738_v47 = vor.u32 %v2988_v40, %v2987_v43 }
 0x338   : > { %v1140_v37 = vmul.f32 %v1103_v31, %v1094_v12  ;;  %v1054_v30 = vmul.f32 %v1017_v35, %v1009_v19  ;;  %v1545_v48 = vrot.slane %v4714_v46, %v4342_v4  ;;  %v1369_v57 = vrot.slane %v4681_v29, %v4339_v3 }
 0x339   : > { %v1359_v31 = vsel %vm1352_vm5, %v4570_v56, %v1339_v21  ;;  %v1407_v35 = vmul.f32 %v1373_v51, %v1358_v0  ;;  %v2991_v21 = vld [vmem:[%s5403_s7 + $0x40] ss:$8 sm:$0xf]  ;;  %v1459_v40 = vrot.slane %v4738_v47, %v4342_v4  ;;  %v1541_v51 = vrot.slane %v4714_v46, %v4339_v3 }
 0x33a   : > { %v3305_v7 = vpack.c.bf16 %v1140_v37, %v1054_v30  ;;  %v4745_v27 = vpop.permute.xlu1 %1256  ;;  %v4747_v36 = vpop.permute.xlu0 %1170  ;;  %v1530_v37 = vsel %vm1524_vm7, %v4639_v44, %v4584_v61  ;;  %v2992_v0 = vld [vmem:[%s5403_s7 + $0x40] ss:$8 sm:$0xf0]  ;;  %v1406_v12 = vmul.f32 %v1369_v57, %v1359_v31  ;;  %v4792_v57 = vsub.s32 5, %v4336_v2 }
 0x33b   : > { %v1266_v43 = vsel %vm1258_vm3, %v4745_v27, %v4562_v54  ;;  %v1180_v30 = vsel %vm1172_vm4, %v4747_v36, %v4554_v50  ;;  %v1444_v50 = vsel %vm1438_vm6, %v4637_v42, %v4576_v59  ;;  %v1445_v31 = vsel %vm1438_vm6, %v4560_v53, %v4637_v42 }
 0x33c   : > { %v1312_v41 = vmul.f32 %v1275_v16, %v1266_v43  ;;  %v1226_v54 = vmul.f32 %v1189_v11, %v1180_v30  ;;  %3306 = vmatpush1.bf16.msra.mxu1 %v3305_v7  ;;  %v1531_v7 = vsel %vm1524_vm7, %v4607_v17, %v4639_v44  ;;  %v4786_v16 = vor.u32 %v2992_v0, %v2991_v21 }
 0x33d   : > { %3308 = vmatprep.subr.bf16.mxu1 %v3307_v58  ;;  %v1579_v58 = vmul.f32 %v1545_v48, %v1530_v37  ;;  %v3311_v11 = vpack.c.bf16 %v1407_v35, %v4448_v52  ;;  %v1455_v43 = vrot.slane %v4738_v47, %v4339_v3  ;;  %v1493_v30 = vmul.f32 %v1459_v40, %v1444_v50 }
 0x33e   : > { %v3309_v19 = vpack.c.bf16 %v1312_v41, %v1226_v54  ;;  %v4778_v62 = vpop.permute.xlu1 %1348  ;;  %v4780_v56 = vpop.permute.xlu0 %1344  ;;  %v4800_v44 = vsub.s32 4, %v4336_v2  ;;  %v1578_v52 = vmul.f32 %v1541_v51, %v1531_v7  ;;  %v3313_v48 = vpack.c.bf16 %v1406_v12, %v4428_v39 }
 0x33f   : > { %v1627_v21 = vrot.slane %v4786_v16, %v4339_v3  ;;  %v1631_v42 = vrot.slane %v4786_v16, %v4342_v4  ;;  %v3315_v41 = vpack.c.bf16 %v1579_v58, %v1493_v30  ;;  %v1492_v54 = vmul.f32 %v1455_v43, %v1445_v31 }
 0x340   : > { %3310 = vmatpush1.bf16.msra.mxu1 %v3309_v19  ;;  %v1119_v0 = vrot.slane %v4609_v18, %v4800_v44  ;;  %v1616_v39 = vsel %vm1610_vm8, %v4641_v20, %v4618_v24  ;;  %v1037_v40 = vrot.slane %v4615_v23, %v4792_v57  ;;  %v1123_v3 = vrot.slane %v4609_v18, %v4792_v57 }
 0x341   : > { %3312 = vmatprep.subr.bf16.mxu1 %v3311_v11  ;;  %v1033_v4 = vrot.slane %v4615_v23, %v4800_v44  ;;  %v1090_v50 = vsel %vm1086_vm1, %v4645_v28, %v4683_v9  ;;  %v1295_v12 = vrot.slane %v4663_v63, %v4792_v57  ;;  %v3317_v19 = vpack.c.bf16 %v1578_v52, %v1492_v54 }
 0x342   : > { %v4803_v35 = vpop.permute.xlu1 %1166  ;;  %v4805_v37 = vpop.permute.xlu0 %993  ;;  %v1617_v7 = vsel %vm1610_vm8, %v4568_v55, %v4641_v20  ;;  %v1291_v58 = vrot.slane %v4663_v63, %v4800_v44  ;;  %v1209_v11 = vrot.slane %v4675_v13, %v4792_v57  ;;  %v1665_v30 = vmul.f32 %v1631_v42, %v1616_v39 }
 0x343   : > { %5457 = vst [vmem:[#allocation29_spill] sm:$0xff] %v4803_v35  ;;  %v1004_v51 = vsel %vm1001_vm2, %v4665_v1, %v4805_v37  ;;  %v1005_v52 = vsel %vm1001_vm2, %v4643_v26, %v4665_v1  ;;  %v1175_v42 = vsel %vm1172_vm4, %v4667_v6, %v4803_v35  ;;  %v1205_v1 = vrot.slane %v4675_v13, %v4800_v44 }
 0x344   : > { %3314 = vmatpush1.bf16.msra.mxu1 %v3313_v48  ;;  %v1059_v54 = vmul.f32 %v1037_v40, %v1004_v51  ;;  %v1262_v55 = vsel %vm1258_vm3, %v4647_v33, %v4685_v10  ;;  %v4874_v40 = vld [vmem:[%s5401_s5] sm:$0xf] }
 0x345   : > { %3316 = vmatprep.subr.bf16.mxu1 %v3315_v41  ;;  %v1144_v41 = vmul.f32 %v1119_v0, %v1090_v50  ;;  %v1058_v0 = vmul.f32 %v1033_v4, %v1005_v52  ;;  %v1385_v4 = vrot.slane %v4681_v29, %v4800_v44 }
 0x346   : > { %v4841_v43 = vpop.permute.xlu1 %1252  ;;  %v4843_v31 = vpop.permute.xlu0 %1080 }
 0x347   : > { %v1261_v20 = vsel %vm1258_vm3, %v4685_v10, %v4841_v43  ;;  %v1089_v48 = vsel %vm1086_vm1, %v4683_v9, %v4843_v31  ;;  %v1664_v9 = vmul.f32 %v1627_v21, %v1617_v7  ;;  %v1176_v10 = vsel %vm1172_vm4, %v4649_v34, %v4667_v6 }
 0x348   : > { %v1145_v39 = vmul.f32 %v1123_v3, %v1089_v48  ;;  %3318 = vmatpush1.bf16.msra.mxu1 %v3317_v19  ;;  %v1317_v53 = vmul.f32 %v1295_v12, %v1261_v20  ;;  %v1231_v3 = vmul.f32 %v1209_v11, %v1175_v42  ;;  %v3337_v51 = vpack.c.bf16 %v1144_v41, %v1058_v0 }
 0x349   : > { %1779 = vmatprep.subr.mxu1 %v1665_v30  ;;  %v1316_v21 = vmul.f32 %v1291_v58, %v1262_v55  ;;  %v1389_v12 = vrot.slane %v4681_v29, %v4792_v57  ;;  %v1230_v7 = vmul.f32 %v1205_v1, %v1176_v10  ;;  %v5458_v6 = vmov 0.0  }
 0x34a   : > { %v4867_v50 = vpop.permute.xlu1 %1430  ;;  %v4869_v17 = vpop.permute.xlu0 %1434  ;;  %v3335_v35 = vpack.c.bf16 %v1145_v39, %v1059_v54  ;;  %v3339_v19 = vpack.c.bf16 %v1317_v53, %v1231_v3  ;;  %v1475_v55 = vrot.slane %v4738_v47, %v4792_v57  ;;  %v1561_v48 = vrot.slane %v4714_v46, %v4792_v57 }
 0x34b   : > { %v3341_v11 = vpack.c.bf16 %v1316_v21, %v1230_v7  ;;  %v1471_v1 = vrot.slane %v4738_v47, %v4800_v44 }
 0x34c   : > { %1780 = vmatpush1.msra.mxu1 %v1664_v9 }
 0x34d   : > { %3336 = vmatprep.subr.bf16.mxu1 %v3335_v35  ;;  %2993 = vmatmul.mubr.msk.f32.vlgmr.msra.gmra.mrb[4].mxu1 %vm1759_vm9, %v4874_v40 }
 0x34e   : > { %v1433_v30 = vpop.permute.xlu1 %1432  ;;  %3338 = vmatpush1.bf16.msra.mxu1 %v3337_v51  ;;  %v1347_v52 = vpop.permute.xlu0 %1346  ;;  %1969 = vmatprep.mubr.f32.mxu1 %v5458_v6  ;;  %v1557_v51 = vrot.slane %v4714_v46, %v4800_v44 }
 0x34f   : > { %v1354_v58 = vsel %vm1352_vm5, %v1347_v52, %v4778_v62  ;;  %v1355_v35 = vsel %vm1352_vm5, %v4780_v56, %v1347_v52  ;;  %3340 = vmatprep.subr.bf16.mxu1 %v3339_v19  ;;  %v1440_v41 = vsel %vm1438_vm6, %v1433_v30, %v4869_v17  ;;  %v1441_v21 = vsel %vm1438_vm6, %v4867_v50, %v1433_v30 }
 0x350   : > { %v1410_v53 = vmul.f32 %v1385_v4, %v1355_v35  ;;  %v1411_v20 = vmul.f32 %v1389_v12, %v1354_v58  ;;  %v1497_v0 = vmul.f32 %v1475_v55, %v1440_v41  ;;  %v1496_v7 = vmul.f32 %v1471_v1, %v1441_v21 }
 0x351   : > { %v1647_v52 = vrot.slane %v4786_v16, %v4792_v57  ;;  %v1643_v58 = vrot.slane %v4786_v16, %v4800_v44  ;;  %v1115_v44 = vrot.slane %v4609_v18, %v4348_v8  ;;  %v1029_v41 = vrot.slane %v4615_v23, %v4348_v8 }
 0x352   : > { %v1519_v42 = vpop.permute.xlu1 %1518  ;;  %3342 = vmatpush1.bf16.msra.mxu1 %v3341_v11  ;;  %v4900_v54 = vpop.permute.xlu0 %1520  ;;  %v3343_v39 = vpack.c.bf16 %v1411_v20, %v4510_v38  ;;  %v3345_v10 = vpack.c.bf16 %v1410_v53, %v4484_v22  ;;  %v1111_v20 = vrot.slane %v4609_v18, %v4345_v5 }
 0x353   : > { %v1526_v9 = vsel %vm1524_vm7, %v1519_v42, %v4900_v54 }
 0x354   : > { %v1583_v3 = vmul.f32 %v1561_v48, %v1526_v9  ;;  %3344 = vmatprep.subr.bf16.mxu1 %v3343_v39  ;;  %v1025_v48 = vrot.slane %v4615_v23, %v4345_v5 }
 0x356   : > { %v1605_v38 = vpop.permute.xlu1 %1604  ;;  %3346 = vmatpush1.bf16.msra.mxu1 %v3345_v10  ;;  %v4914_v4 = vpop.permute.xlu0 %1516  ;;  %v3347_v12 = vpack.c.bf16 %v1583_v3, %v1497_v0  ;;  %v1287_v0 = vrot.slane %v4663_v63, %v4348_v8  ;;  %v1197_v10 = vrot.slane %v4675_v13, %v4345_v5  ;;  %v1201_v3 = vrot.slane %v4675_v13, %v4348_v8 }
 0x357   : > { %v1527_v19 = vsel %vm1524_vm7, %v4914_v4, %v1519_v42  ;;  %v1283_v42 = vrot.slane %v4663_v63, %v4345_v5 }
 0x358   : > { %v1582_v22 = vmul.f32 %v1557_v51, %v1527_v19  ;;  %3348 = vmatprep.subr.bf16.mxu1 %v3347_v12  ;;  %v2047_v19 = vld [vmem:[%s5405_s9] sm:$0xff] }
 0x35a   : > { %v3349_v55 = vpack.c.bf16 %v1582_v22, %v1496_v7  ;;  %v4923_v30 = vpop.permute.xlu1 %1602  ;;  %v4925_v35 = vpop.permute.xlu0 %1606 }
 0x35b   : > { %v1613_v11 = vsel %vm1610_vm8, %v4923_v30, %v1605_v38  ;;  %v1612_v53 = vsel %vm1610_vm8, %v1605_v38, %v4925_v35 }
 0x35c   : > { %v1669_v57 = vmul.f32 %v1647_v52, %v1612_v53  ;;  %3350 = vmatpush1.bf16.msra.mxu1 %v3349_v55  ;;  %v1668_v39 = vmul.f32 %v1643_v58, %v1613_v11  ;;  %v1381_v53 = vrot.slane %v4681_v29, %v4348_v8 }
 0x35e   : > { %v1075_v1 = vpop.permute.xlu1 %1074  ;;  %1921 = vmatprep.subr.mxu1 %v1669_v57  ;;  %v988_v9 = vpop.permute.xlu0 %987 }
 0x35f   : > { %v1091_v51 = vsel %vm1086_vm1, %v1075_v1, %v4645_v28  ;;  %v1092_v21 = vsel %vm1086_vm1, %v4578_v60, %v1075_v1  ;;  %v1006_v38 = vsel %vm1001_vm2, %v988_v9, %v4643_v26  ;;  %v1007_v12 = vsel %vm1001_vm2, %v4631_v32, %v988_v9  ;;  %v3605_v60 = vld [vmem:[%s4184_s19] sm:$0xf]  ;;  %s5341_s19 = scalar_lea.vmem [#allocation14], %s2977_s15 }
 0x360   : > { %v1142_v7 = vmul.f32 %v1111_v20, %v1092_v21  ;;  %v1143_v22 = vmul.f32 %v1115_v44, %v1091_v51  ;;  %v1056_v52 = vmul.f32 %v1025_v48, %v1007_v12  ;;  %v1057_v28 = vmul.f32 %v1029_v41, %v1006_v38  ;;  %1922 = vmatpush1.msra.mxu1 %v1668_v39  ;;  %s2842_s28 = sshll.u32 %s5341_s19, 4  ;;  %s5353_s28 = int_to_ptr.vmem [resolvable:$true] %s2842_s28 }
 0x361   : > { %2995 = vmatmul.mubr.msk.f32.vlgmr.msra.gmra.mrb[6].mxu1 %vm1759_vm9, %v4874_v40  ;;  %3025 = vmatprep.subr.msk.mxu1 %vm508_vm0, %v3605_v60  ;;  %v1377_v32 = vrot.slane %v4681_v29, %v4345_v5  ;;  %v1549_v12 = vrot.slane %v4714_v46, %v4345_v5  ;;  %s3776_s14 = scalar_lea.vmem %s5353_s28, 512  ;;  %p3783_p1 = scmp.lt.s32.totalorder %s5353_s28, %s3781_s26 }
 0x362   : > { %v3321_v26 = vpack.c.bf16 %v1142_v7, %v1056_v52  ;;  %v1247_v55 = vpop.permute.xlu1 %1246  ;;  %v1161_v58 = vpop.permute.xlu0 %1160  ;;  %v3319_v11 = vpack.c.bf16 %v1143_v22, %v1057_v28  ;;  %3027 = vmatprep.mubr.msk.f32.mxu1 %vm508_vm0, %v2047_v19  ;;  %v1553_v19 = vrot.slane %v4714_v46, %v4348_v8  ;;  %v5013_v22 = vsub.s32 6, %v4336_v2  ;;  %p3777_p7 = scmp.ne.s32.totalorder %s5353_s28, %s3776_s14 }
 0x363   : > { %v1263_v20 = vsel %vm1258_vm3, %v1247_v55, %v4647_v33  ;;  %v1264_v57 = vsel %vm1258_vm3, %v4622_v25, %v1247_v55  ;;  %v1177_v44 = vsel %vm1172_vm4, %v1161_v58, %v4649_v34  ;;  %v1178_v48 = vsel %vm1172_vm4, %v4605_v15, %v1161_v58  ;;  %v5459_v55 = vld [vmem:[#allocation20_spill] sm:$0xff] }
 0x364   : > { %v1314_v41 = vmul.f32 %v1283_v42, %v1264_v57  ;;  %v1315_v39 = vmul.f32 %v1287_v0, %v1263_v20  ;;  %v1228_v1 = vmul.f32 %v1197_v10, %v1178_v48  ;;  %v1229_v9 = vmul.f32 %v1201_v3, %v1177_v44  ;;  %3320 = vmatprep.subr.bf16.mxu0 %v3319_v11  ;;  %v2048_v0 = vld [vmem:[%s5405_s9 + $0x8] sm:$0xff]  ;;  %v2050_v11 = vld [vmem:[%s5405_s9 + $0x18] sm:$0xff]  ;;  %p3778_p12 = pnand %p3777_p7, %p5473_p4 }
 0x365   : > { %3322 = vmatpush1.bf16.msra.mxu0 %v3321_v26  ;;  %v1463_v25 = vrot.slane %v4738_v47, %v4345_v5  ;;  %v1467_v34 = vrot.slane %v4738_v47, %v4348_v8  ;;  %v5016_v52 = vsub.s32 7, %v4336_v2  ;;  %v1639_v2 = vrot.slane %v4786_v16, %v4348_v8 }
 0x366   : > { %v3325_v51 = vpack.c.bf16 %v1314_v41, %v1228_v1  ;;  %v1429_v33 = vpop.permute.xlu1 %1428  ;;  %v1343_v21 = vpop.permute.xlu0 %1342  ;;  %v3323_v38 = vpack.c.bf16 %v1315_v39, %v1229_v9  ;;  %v1041_v8 = vrot.slane %v4615_v23, %v5013_v22  ;;  %v1635_v44 = vrot.slane %v4786_v16, %v4345_v5  ;;  %v5460_v41 = vld [vmem:[#allocation28_spill] sm:$0xff]  ;;  %p3779_p13 = pneg %p3778_p12 }
 0x367   : > { %v1356_v15 = vsel %vm1352_vm5, %v1343_v21, %v4780_v56  ;;  %v1357_v42 = vsel %vm1352_vm5, %v4552_v49, %v1343_v21  ;;  %3026 = vmatpush3.xpose.msk.msra.mxu1 %vm508_vm0, %v3605_v60  ;;  %v2049_v56 = vld [vmem:[%s5405_s9 + $0x10] sm:$0xff]  ;;  %v1442_v49 = vsel %vm1438_vm6, %v1429_v33, %v4867_v50  ;;  %v1443_v7 = vsel %vm1438_vm6, %v4576_v59, %v1429_v33 }
 0x368   : > { %v1408_v10 = vmul.f32 %v1377_v32, %v1357_v42  ;;  %v1409_v3 = vmul.f32 %v1381_v53, %v1356_v15  ;;  %3324 = vmatprep.subr.bf16.mxu0 %v3323_v38  ;;  %v1494_v32 = vmul.f32 %v1463_v25, %v1443_v7  ;;  %v1495_v53 = vmul.f32 %v1467_v34, %v1442_v49  ;;  %v2052_v25 = vld [vmem:[%s5405_s9 + $0x28] sm:$0xff]  ;;  %v2053_v42 = vld [vmem:[%s5405_s9 + $0x30] sm:$0xff] }
 0x369   : > { %3326 = vmatpush1.bf16.msra.mxu0 %v3325_v51  ;;  %v1045_v57 = vrot.slane %v4615_v23, %v5016_v52  ;;  %v1127_v48 = vrot.slane %v4609_v18, %v5013_v22  ;;  %v5461_v23 = vld [vmem:[#allocation27_spill] sm:$0xff]  ;;  %v1217_v15 = vrot.slane %v4675_v13, %v5016_v52 }
 0x36a   : > { %v3329_v28 = vpack.c.bf16 %v1408_v10, %v4434_v45  ;;  %v996_v60 = vpop.permute.xlu1 %995  ;;  %3028 = vmatmul.mubr.msk.f32.vlgmr.msra.gmra.mrb[8].mxu1 %vm508_vm0, %v2048_v0  ;;  %v1515_v26 = vpop.permute.xlu0 %1514  ;;  %v3327_v58 = vpack.c.bf16 %v1409_v3, %v5459_v55  ;;  %v1131_v45 = vrot.slane %v4609_v18, %v5016_v52  ;;  %v1299_v0 = vrot.slane %v4663_v63, %v5013_v22 }
 0x36b   : > { %v1528_v50 = vsel %vm1524_vm7, %v1515_v26, %v4914_v4  ;;  %v1529_v59 = vsel %vm1524_vm7, %v4584_v61, %v1515_v26  ;;  %3030 = vmatprep.mubr.msk.f32.mxu1 %vm508_vm0, %v2049_v56  ;;  %v2051_v61 = vld [vmem:[%s5405_s9 + $0x20] sm:$0xff]  ;;  %v1002_v39 = vsel %vm1001_vm2, %v996_v60, %v5460_v41  ;;  %v1003_v1 = vsel %vm1001_vm2, %v4805_v37, %v996_v60 }
 0x36c   : > { %v1580_v20 = vmul.f32 %v1549_v12, %v1529_v59  ;;  %v1581_v4 = vmul.f32 %v1553_v19, %v1528_v50  ;;  %3328 = vmatprep.subr.bf16.mxu0 %v3327_v58  ;;  %v1213_v10 = vrot.slane %v4675_v13, %v5013_v22  ;;  %v1060_v3 = vmul.f32 %v1041_v8, %v1003_v1  ;;  %v5462_v13 = vld [vmem:[#allocation29_spill] sm:$0xff] }
 0x36d   : > { %3330 = vmatpush1.bf16.msra.mxu0 %v3329_v28  ;;  %v1061_v12 = vmul.f32 %v1045_v57, %v1002_v39  ;;  %v1479_v8 = vrot.slane %v4738_v47, %v5013_v22  ;;  %v1483_v57 = vrot.slane %v4738_v47, %v5016_v52  ;;  %v5465_v1 = vld [vmem:[#allocation21_spill] sm:$0xff] }
 0x36e   : > { %v3333_v9 = vpack.c.bf16 %v1580_v20, %v1494_v32  ;;  %v1601_v51 = vpop.permute.xlu1 %1600  ;;  %v1083_v33 = vpop.permute.xlu0 %1082  ;;  %v3331_v21 = vpack.c.bf16 %v1581_v4, %v1495_v53  ;;  %3031 = vmatmul.mubr.msk.f32.gmra.mrb[10].mxu1 %vm508_vm0, %v2050_v11  ;;  %v2054_v32 = vld [vmem:[%s5405_s9 + $0x38] sm:$0xff]  ;;  %v5463_v20 = vld [vmem:[#allocation25_spill] sm:$0xff] }
 0x36f   : > { %v1614_v5 = vsel %vm1610_vm8, %v1601_v51, %v4923_v30  ;;  %v1615_v18 = vsel %vm1610_vm8, %v4618_v24, %v1601_v51  ;;  %v1087_v38 = vsel %vm1086_vm1, %v1083_v33, %v5461_v23  ;;  %v1088_v37 = vsel %vm1086_vm1, %v4843_v31, %v1083_v33  ;;  %3033 = vmatprep.mubr.msk.f32.mxu1 %vm508_vm0, %v2051_v61  ;;  %v5466_v33 = vld [vmem:[#allocation23_spill] sm:$0xff] }
 0x370   : > { %v1667_v34 = vmul.f32 %v1639_v2, %v1614_v5  ;;  %v1147_v30 = vmul.f32 %v1131_v45, %v1087_v38  ;;  %3332 = vmatprep.subr.bf16.mxu0 %v3331_v21  ;;  %v1303_v24 = vrot.slane %v4663_v63, %v5016_v52  ;;  %v1146_v31 = vmul.f32 %v1127_v48, %v1088_v37  ;;  %v5464_v48 = vld [vmem:[#allocation26_spill] sm:$0xff] }
 0x371   : > { %3334 = vmatpush1.bf16.msra.mxu0 %v3333_v9  ;;  %v1666_v19 = vmul.f32 %v1635_v44, %v1615_v18  ;;  %v1565_v51 = vrot.slane %v4714_v46, %v5013_v22  ;;  %v5467_v37 = vld [vmem:[#allocation22_spill] sm:$0xff] }
 0x372   : > { %v1255_v56 = vpop.permute.xlu1 %1254  ;;  %1850 = vmatprep.subr.mxu0 %v1667_v34  ;;  %v1169_v49 = vpop.permute.xlu0 %1168  ;;  %3034 = vmatmul.mubr.msk.f32.gmra.mrb[12].mxu1 %vm508_vm0, %v2052_v25  ;;  %v3351_v58 = vpack.c.bf16 %v1147_v30, %v1061_v12  ;;  %v3353_v50 = vpack.c.bf16 %v1146_v31, %v1060_v3  ;;  %v1655_v34 = vrot.slane %v4786_v16, %v5016_v52  ;;  %v3874_v3 = vmov 0  }
 0x373   : > { %v1259_v7 = vsel %vm1258_vm3, %v1255_v56, %v4745_v27  ;;  %v1260_v28 = vsel %vm1258_vm3, %v4841_v43, %v1255_v56  ;;  %v1173_v63 = vsel %vm1172_vm4, %v1169_v49, %v4747_v36  ;;  %v1174_v60 = vsel %vm1172_vm4, %v5462_v13, %v1169_v49  ;;  %3036 = vmatprep.mubr.msk.f32.mxu1 %vm508_vm0, %v2053_v42 }
 0x374   : > { %v1319_v26 = vmul.f32 %v1303_v24, %v1259_v7  ;;  %v1233_v55 = vmul.f32 %v1217_v15, %v1173_v63  ;;  %v1397_v27 = vrot.slane %v4681_v29, %v5016_v52  ;;  %v1318_v59 = vmul.f32 %v1299_v0, %v1260_v28  ;;  %v5468_v24 = vld [vmem:[#allocation24_spill] sm:$0xff]  ;;  %3543 = vset.pattern.permute.xlu0 %v3874_v3 }
 0x375   : > { %v1232_v2 = vmul.f32 %v1213_v10, %v1174_v60  ;;  %1851 = vmatpush1.msra.mxu0 %v1666_v19  ;;  %v1393_v43 = vrot.slane %v4681_v29, %v5013_v22  ;;  %v1569_v29 = vrot.slane %v4714_v46, %v5016_v52  ;;  %v3873_v10 = vmov 1  }
 0x376   : > { %v1523_v36 = vpop.permute.xlu1 %1522  ;;  %3352 = vmatprep.subr.bf16.mxu0 %v3351_v58  ;;  %v1351_v45 = vpop.permute.xlu0 %1350  ;;  %2994 = vmatmul.mubr.msk.f32.vlgmr.msra.gmra.mrb[6].mxu0 %vm1759_vm9, %v4874_v40  ;;  %v3355_v11 = vpack.c.bf16 %v1319_v26, %v1233_v55  ;;  %v3875_v56 = vmov 2   ;;  %v3876_v49 = vmov 3   ;;  %v1753_v26 = vld [vmem:[%s5469_s6] sm:$0xf] }
 0x377   : > { %v1353_v53 = vsel %vm1352_vm5, %v4778_v62, %v1351_v45  ;;  %v1360_v4 = vsel %vm1352_vm5, %v1351_v45, %v5463_v20  ;;  %3354 = vmatpush1.bf16.msra.mxu0 %v3353_v50  ;;  %v3357_v44 = vpack.c.bf16 %v1318_v59, %v1232_v2  ;;  %v1532_v62 = vsel %vm1524_vm7, %v1523_v36, %v5464_v48  ;;  %v2465_v55 = vld [vmem:[%s5470_s16] sm:$0xf]  ;;  %s2828_s16 = scalar_lea.sflag [#allocation5], %s4180_s17 }
 0x378   : > { %v1413_v61 = vmul.f32 %v1397_v27, %v1360_v4  ;;  %3356 = vmatprep.subr.bf16.mxu0 %v3355_v11  ;;  %v1412_v41 = vmul.f32 %v1393_v43, %v1353_v53  ;;  %3037 = vmatmul.mubr.msk.f32.gmra.mrb[14].mxu1 %vm508_vm0, %v2054_v32  ;;  %v1525_v5 = vsel %vm1524_vm7, %v4900_v54, %v1523_v36  ;;  %v5186_v36 = vld [vmem:[#allocation12 + $0x10] sm:$0xff]  ;;  %v5188_v45 = vld [vmem:[#allocation12 + $0x18] sm:$0xff] }
 0x379   : > { %2040 = vmatprep.mubr.f32.mxu0 %v5458_v6  ;;  %2539 = vmatprep.mubr.f32.mxu1 %v5458_v6  ;;  %v1585_v18 = vmul.f32 %v1569_v29, %v1532_v62  ;;  %v1584_v30 = vmul.f32 %v1565_v51, %v1525_v5  ;;  %v1651_v54 = vrot.slane %v4786_v16, %v5013_v22  ;;  %v5198_v29 = vld [vmem:[#allocation12] sm:$0xff] }
 0x37a   : > { %v1437_v39 = vpop.permute.xlu0 %1436  ;;  %v3359_v9 = vpack.c.bf16 %v1413_v61, %v5465_v1  ;;  %v1609_v23 = vpop.permute.xlu1 %1608  ;;  %v3361_v25 = vpack.c.bf16 %v1412_v41, %v5467_v37  ;;  %3544 = vset.pattern.permute.xlu1 %v3873_v10  ;;  %v5200_v61 = vld [vmem:[#allocation12 + $0x8] sm:$0xff] }
 0x37b   : > { %v1439_v47 = vsel %vm1438_vm6, %v4869_v17, %v1437_v39  ;;  %v1446_v21 = vsel %vm1438_vm6, %v1437_v39, %v5466_v33  ;;  %3358 = vmatpush1.bf16.msra.mxu0 %v3357_v44  ;;  %v1618_v15 = vsel %vm1610_vm8, %v1609_v23, %v5468_v24  ;;  %v1611_v31 = vsel %vm1610_vm8, %v4925_v35, %v1609_v23  ;;  %v5214_v24 = vld [vmem:[#allocation12 + $0x20] sm:$0xff] }
 0x37c   : > { %v1499_v38 = vmul.f32 %v1483_v57, %v1446_v21  ;;  %3360 = vmatprep.subr.bf16.mxu0 %v3359_v9  ;;  %v1498_v46 = vmul.f32 %v1479_v8, %v1439_v47  ;;  %v1671_v0 = vmul.f32 %v1655_v34, %v1618_v15  ;;  %v1670_v52 = vmul.f32 %v1651_v54, %v1611_v31  ;;  %v5216_v15 = vld [vmem:[#allocation12 + $0x28] sm:$0xff] }
 0x37e   : > { %v3363_v17 = vpack.c.bf16 %v1585_v18, %v1499_v38  ;;  %v3365_v42 = vpack.c.bf16 %v1584_v30, %v1498_v46 }
 0x37f   : > { %3362 = vmatpush1.bf16.msra.mxu0 %v3361_v25 }
 0x380   : > { %3364 = vmatprep.subr.bf16.mxu0 %v3363_v17 }
 0x383   : > { %3366 = vmatpush1.bf16.msra.mxu0 %v3365_v42 }
 0x384   : > { %1992 = vmatprep.subr.mxu0 %v1671_v0 }
 0x387   : > { %1993 = vmatpush1.msra.mxu0 %v1670_v52 }
 0x388   : > { %2996 = vmatmul.mubr.msk.f32.vlgmr.msra.gmra.mrb[8].mxu0 %vm1759_vm9, %v4874_v40 }
 0x389   : > { %2610 = vmatprep.mubr.f32.mxu0 %v5458_v6 }
 0x420   : > { %v5149_v16 = vpop.f32.mrb[4].mxu1 }
 0x421   : > { %v5151_v14 = vpop.f32.mrb[5].mxu1 }
 0x434   : > { %v5153_v35 = vpop.f32.mrb[6].mxu1 }
 0x435   : > { %v5155_v22 = vpop.f32.mrb[7].mxu1 }
 0x43d   : > { %v3029_v12 = vpop.f32.mrb[8].mxu1 }
 0x43e   : > { %2277 = vperm.xlu1 %3544, %v3029_v12   ;;  %2207 = vperm.xlu0 %3543, %v3029_v12   ;;  %v2145_v40 = vpop.f32.mrb[9].mxu1 }
 0x441   : > { %v3032_v19 = vpop.f32.mrb[10].mxu1 }
 0x442   : > { %3545 = vset.pattern.permute.xlu1 %v3875_v56  ;;  %3546 = vset.pattern.permute.xlu0 %v3876_v49  ;;  %v2155_v7 = vpop.f32.mrb[11].mxu1 }
 0x443   : > { %2341 = vperm.xlu1 %3545, %v3029_v12   ;;  %2405 = vperm.xlu0 %3546, %v3029_v12   ;;  %v5224_v12 = vld [vmem:[#allocation12 + $0x38] sm:$0xff] }
 0x445   : > { %v3035_v28 = vpop.f32.mrb[12].mxu1 }
 0x446   : > { %v2165_v63 = vpop.f32.mrb[13].mxu1 }
 0x447   : > { %3547 = vset.pattern.permute.xlu1 %v3874_v3  ;;  %3549 = vset.pattern.permute.xlu0 %v3875_v56 }
 0x448   : > { %2337 = vperm.xlu0 %3549, %v2145_v40   ;;  %2202 = vperm.xlu1 %3547, %v2145_v40  }
 0x449   : > { %v5178_v58 = vpop.f32.mrb[6].mxu0 }
 0x44a   : > { %v5180_v27 = vpop.f32.mrb[7].mxu0 }
 0x44b   : > { %v3038_v13 = vpop.f32.mrb[14].mxu1 }
 0x44c   : > { %3555 = vset.pattern.permute.xlu0 %v3874_v3  ;;  %3548 = vset.pattern.permute.xlu1 %v3873_v10  ;;  %v2175_v60 = vpop.f32.mrb[15].mxu1 }
 0x44d   : > { %2273 = vperm.xlu1 %3548, %v2145_v40   ;;  %2212 = vperm.xlu0 %3555, %v2155_v7  }
 0x451   : > { %3550 = vset.pattern.permute.xlu1 %v3876_v49  ;;  %3556 = vset.pattern.permute.xlu0 %v3873_v10 }
 0x452   : > { %2401 = vperm.xlu1 %3550, %v2145_v40   ;;  %2281 = vperm.xlu0 %3556, %v2155_v7  }
 0x456   : > { %3551 = vset.pattern.permute.xlu1 %v3874_v3  ;;  %2293 = vperm.xlu0 %3556, %v3035_v28  }
 0x457   : > { %2217 = vperm.xlu1 %3551, %v3032_v19  }
 0x45a   : > { %3559 = vset.pattern.permute.xlu0 %v3874_v3 }
 0x45b   : > { %3552 = vset.pattern.permute.xlu1 %v3873_v10  ;;  %2222 = vperm.xlu0 %3559, %v2165_v63   ;;  %v5182_v50 = vpop.f32.mrb[8].mxu0 }
 0x45c   : > { %2285 = vperm.xlu1 %3552, %v3032_v19   ;;  %v5184_v59 = vpop.f32.mrb[9].mxu0 }
 0x45f   : > { %3561 = vset.pattern.permute.xlu0 %v3875_v56 }
 0x460   : > { %3553 = vset.pattern.permute.xlu1 %v3875_v56  ;;  %2353 = vperm.xlu0 %3561, %v2165_v63  }
 0x461   : > { %2349 = vperm.xlu1 %3553, %v3032_v19  }
 0x464   : > { %3565 = vset.pattern.permute.xlu0 %v3873_v10 }
 0x465   : > { %3554 = vset.pattern.permute.xlu1 %v3876_v49  ;;  %2297 = vperm.xlu0 %3565, %v2175_v60  }
 0x466   : > { %2413 = vperm.xlu1 %3554, %v3032_v19  }
 0x469   : > { %3566 = vset.pattern.permute.xlu0 %v3876_v49 }
 0x46a   : > { %3557 = vset.pattern.permute.xlu1 %v3875_v56  ;;  %2409 = vperm.xlu0 %3566, %v2155_v7  }
 0x46b   : > { %2345 = vperm.xlu1 %3557, %v2155_v7  }
 0x46e   : > { %2421 = vperm.xlu0 %3566, %v3035_v28  }
 0x46f   : > { %3558 = vset.pattern.permute.xlu1 %v3874_v3 }
 0x470   : > { %2227 = vperm.xlu1 %3558, %v3035_v28  }
 0x472   : > { %2425 = vperm.xlu0 %3566, %v2175_v60  }
 0x474   : > { %3560 = vset.pattern.permute.xlu1 %v3873_v10 }
 0x475   : > { %2289 = vperm.xlu1 %3560, %v2165_v63  }
 0x476   : > { %3571 = vset.pattern.permute.xlu0 %v3874_v3 }
 0x477   : > { %1756 = vperm.xlu0 %3571, %v1753_v26  }
 0x479   : > { %3562 = vset.pattern.permute.xlu1 %v3874_v3 }
 0x47a   : > { %2237 = vperm.xlu1 %3562, %v3038_v13  }
 0x47e   : > { %3563 = vset.pattern.permute.xlu1 %v3873_v10 }
 0x47f   : > { %2301 = vperm.xlu1 %3563, %v3038_v13  }
 0x483   : > { %3564 = vset.pattern.permute.xlu1 %v3874_v3 }
 0x484   : > { %2232 = vperm.xlu1 %3564, %v2175_v60  }
 0x488   : > { %3567 = vset.pattern.permute.xlu1 %v3875_v56 }
 0x489   : > { %2357 = vperm.xlu1 %3567, %v3035_v28  }
 0x48d   : > { %3568 = vset.pattern.permute.xlu1 %v3876_v49 }
 0x48e   : > { %2417 = vperm.xlu1 %3568, %v2165_v63  }
 0x492   : > { %3569 = vset.pattern.permute.xlu1 %v3875_v56 }
 0x493   : > { %2365 = vperm.xlu1 %3569, %v3038_v13  }
 0x497   : > { %2361 = vperm.xlu1 %3569, %v2175_v60  }
 0x49b   : > { %3570 = vset.pattern.permute.xlu1 %v3876_v49 }
 0x49c   : > { %2429 = vperm.xlu1 %3570, %v3038_v13  }
 0x4a0   : > { %3572 = vset.pattern.permute.xlu1 %v3874_v3  ;;  %v5222_v3 = vld [vmem:[#allocation12 + $0x30] sm:$0xff] }
 0x4a1   : > { %2468 = vperm.xlu1 %3572, %v2465_v55  }
 0x4bd   : > { %v2278_v2 = vpop.permute.xlu1 %2277  ;;  %v2208_v43 = vpop.permute.xlu0 %2207 }
 0x4be   : > { %v2242_v20 = vadd.f32 %v2208_v43, %v5186_v36  ;;  %v2243_v4 = vadd.f32 %v2208_v43, %v5188_v45  ;;  %v2306_v33 = vadd.f32 %v2278_v2, %v5186_v36  ;;  %v2307_v21 = vadd.f32 %v2278_v2, %v5188_v45 }
 0x4c0   : > { %v2258_v41 = vmax.f32 %v2242_v20, 0.0  ;;  %v2259_v39 = vmax.f32 %v2243_v4, 0.0  ;;  %v2322_v46 = vmax.f32 %v2306_v33, 0.0  ;;  %v2323_v34 = vmax.f32 %v2307_v21, 0.0 }
 0x4c2   : > { %v5190_v11 = vpop.permute.xlu1 %2341  ;;  %v5192_v32 = vpop.permute.xlu0 %2405 }
 0x4c3   : > { %v2370_v53 = vadd.f32 %v5190_v11, %v5186_v36 }
 0x4c5   : > { %v2386_v1 = vmax.f32 %v2370_v53, 0.0 }
 0x4c7   : > { %v2203_v8 = vpop.permute.xlu1 %2202  ;;  %v5202_v57 = vpop.permute.xlu0 %2337 }
 0x4c8   : > { %v2240_v44 = vadd.f32 %v2203_v8, %v5198_v29  ;;  %v2241_v48 = vadd.f32 %v2203_v8, %v5200_v61  ;;  %v2368_v62 = vadd.f32 %v5202_v57, %v5198_v29 }
 0x4ca   : > { %v2256_v9 = vmax.f32 %v2240_v44, 0.0  ;;  %v2257_v51 = vmax.f32 %v2241_v48, 0.0  ;;  %v2384_v47 = vmax.f32 %v2368_v62, 0.0 }
 0x4cc   : > { %v3369_v5 = vpack.c.bf16 %v2258_v41, %v2256_v9  ;;  %v5210_v18 = vpack.c.bf16 %v2386_v1, %v2384_v47  ;;  %v2274_v23 = vpop.permute.xlu1 %2273  ;;  %v3367_v38 = vpack.c.bf16 %v2259_v39, %v2257_v51  ;;  %v2213_v31 = vpop.permute.xlu0 %2212  ;;  %v5236_v51 = vld [vmem:[#allocation12 + $0x40] sm:$0xff]  ;;  %v5238_v47 = vld [vmem:[#allocation12 + $0x48] sm:$0xff] }
 0x4cd   : > { %v2304_v37 = vadd.f32 %v2274_v23, %v5198_v29  ;;  %v2305_v25 = vadd.f32 %v2274_v23, %v5200_v61  ;;  %v2244_v52 = vadd.f32 %v2213_v31, %v5214_v24  ;;  %v2245_v10 = vadd.f32 %v2213_v31, %v5216_v15 }
 0x4ce   : > { %3368 = vmatprep.subr.bf16.mxu1 %v3367_v38  ;;  %v5244_v38 = vld [vmem:[#allocation12 + $0x50] sm:$0xff] }
 0x4cf   : > { %v2320_v17 = vmax.f32 %v2304_v37, 0.0  ;;  %v2321_v30 = vmax.f32 %v2305_v25, 0.0  ;;  %3370 = vmatpush1.bf16.msra.mxu1 %v3369_v5  ;;  %v2260_v19 = vmax.f32 %v2244_v52, 0.0  ;;  %v2261_v56 = vmax.f32 %v2245_v10, 0.0  ;;  %v5246_v37 = vld [vmem:[#allocation12 + $0x58] sm:$0xff] }
 0x4d1   : > { %v3385_v54 = vpack.c.bf16 %v2322_v46, %v2320_v17  ;;  %v5218_v42 = vpop.permute.xlu1 %2401  ;;  %v3383_v0 = vpack.c.bf16 %v2323_v34, %v2321_v30  ;;  %v2282_v49 = vpop.permute.xlu0 %2281 }
 0x4d2   : > { %v2308_v60 = vadd.f32 %v2282_v49, %v5214_v24  ;;  %v2309_v26 = vadd.f32 %v2282_v49, %v5216_v15 }
 0x4d3   : > { %3384 = vmatprep.subr.bf16.mxu0 %v3383_v0 }
 0x4d4   : > { %3386 = vmatpush1.bf16.msra.mxu0 %v3385_v54  ;;  %v2324_v4 = vmax.f32 %v2308_v60, 0.0  ;;  %v2325_v8 = vmax.f32 %v2309_v26, 0.0 }
 0x4d5   : > { %v2294_v1 = vpop.permute.xlu0 %2293 }
 0x4d6   : > { %v2218_v40 = vpop.permute.xlu1 %2217  ;;  %v2314_v52 = vadd.f32 %v2294_v1, %v5244_v38  ;;  %v2315_v10 = vadd.f32 %v2294_v1, %v5246_v37  ;;  %v5268_v1 = vld [vmem:[#allocation12 + $0x70] sm:$0xff] }
 0x4d7   : > { %v2246_v7 = vadd.f32 %v2218_v40, %v5222_v3  ;;  %v2247_v28 = vadd.f32 %v2218_v40, %v5224_v12 }
 0x4d9   : > { %v2262_v63 = vmax.f32 %v2246_v7, 0.0  ;;  %v2263_v13 = vmax.f32 %v2247_v28, 0.0  ;;  %v2330_v28 = vmax.f32 %v2314_v52, 0.0 }
 0x4da   : > { %v2223_v21 = vpop.permute.xlu0 %2222 }
 0x4db   : > { %v3373_v55 = vpack.c.bf16 %v2262_v63, %v2260_v19  ;;  %v2286_v2 = vpop.permute.xlu1 %2285  ;;  %v3371_v43 = vpack.c.bf16 %v2263_v13, %v2261_v56  ;;  %v2248_v5 = vadd.f32 %v2223_v21, %v5236_v51  ;;  %v2249_v23 = vadd.f32 %v2223_v21, %v5238_v47  ;;  %v5270_v21 = vld [vmem:[#allocation12 + $0x78] sm:$0xff] }
 0x4dc   : > { %v2310_v53 = vadd.f32 %v2286_v2, %v5222_v3  ;;  %v2311_v20 = vadd.f32 %v2286_v2, %v5224_v12  ;;  %v2331_v63 = vmax.f32 %v2315_v10, 0.0 }
 0x4dd   : > { %3372 = vmatprep.subr.bf16.mxu1 %v3371_v43  ;;  %v2264_v46 = vmax.f32 %v2248_v5, 0.0  ;;  %v2265_v34 = vmax.f32 %v2249_v23, 0.0  ;;  %v2432_v23 = vadd.f32 %v5218_v42, %v5198_v29 }
 0x4de   : > { %v2326_v44 = vmax.f32 %v2310_v53, 0.0  ;;  %v2327_v48 = vmax.f32 %v2311_v20, 0.0  ;;  %3374 = vmatpush1.bf16.msra.mxu1 %v3373_v55  ;;  %v5256_v55 = vld [vmem:[#allocation12 + $0x60] sm:$0xff]  ;;  %v5258_v20 = vld [vmem:[#allocation12 + $0x68] sm:$0xff] }
 0x4df   : > { %v5250_v54 = vpop.permute.xlu0 %2353 }
 0x4e0   : > { %v3389_v62 = vpack.c.bf16 %v2326_v44, %v2324_v4  ;;  %v5232_v41 = vpop.permute.xlu1 %2349  ;;  %v3387_v39 = vpack.c.bf16 %v2327_v48, %v2325_v8  ;;  %v2433_v4 = vadd.f32 %v5218_v42, %v5200_v61  ;;  %v2434_v48 = vadd.f32 %v5192_v32, %v5186_v36 }
 0x4e1   : > { %v2371_v36 = vadd.f32 %v5190_v11, %v5188_v45 }
 0x4e2   : > { %3388 = vmatprep.subr.bf16.mxu0 %v3387_v39  ;;  %v2450_v10 = vmax.f32 %v2434_v48, 0.0 }
 0x4e3   : > { %3390 = vmatpush1.bf16.msra.mxu0 %v3389_v62  ;;  %v2435_v62 = vadd.f32 %v5192_v32, %v5188_v45  ;;  %v2369_v32 = vadd.f32 %v5202_v57, %v5200_v61 }
 0x4e4   : > { %v2298_v26 = vpop.permute.xlu0 %2297 }
 0x4e5   : > { %v5234_v9 = vpop.permute.xlu1 %2413  ;;  %v2316_v8 = vadd.f32 %v2298_v26, %v5256_v55  ;;  %v2317_v44 = vadd.f32 %v2298_v26, %v5258_v20  ;;  %v2451_v29 = vmax.f32 %v2435_v62, 0.0  ;;  %v2385_v57 = vmax.f32 %v2369_v32, 0.0 }
 0x4e6   : > { %v2439_v45 = vadd.f32 %v5234_v9, %v5224_v12 }
 0x4e8   : > { %v2455_v62 = vmax.f32 %v2439_v45, 0.0 }
 0x4e9   : > { %v2410_v39 = vpop.permute.xlu0 %2409 }
 0x4ea   : > { %v5240_v33 = vpop.permute.xlu1 %2345 }
 0x4ef   : > { %v2228_v25 = vpop.permute.xlu1 %2227 }
 0x4f0   : > { %v2250_v17 = vadd.f32 %v2228_v25, %v5244_v38  ;;  %v2251_v30 = vadd.f32 %v2228_v25, %v5246_v37 }
 0x4f2   : > { %v2266_v31 = vmax.f32 %v2250_v17, 0.0  ;;  %v2267_v0 = vmax.f32 %v2251_v30, 0.0  ;;  %v2332_v17 = vmax.f32 %v2316_v8, 0.0  ;;  %v2333_v30 = vmax.f32 %v2317_v44, 0.0  ;;  %v5295_v8 = vld [vmem:[%s5471_s30] sm:$0xf] }
 0x4f3   : > { %v2387_v44 = vmax.f32 %v2371_v36, 0.0  ;;  %s3782_s30 = scalar_lea.vmem %s3781_s26, 1024 }
 0x4f4   : > { %v3377_v40 = vpack.c.bf16 %v2266_v31, %v2264_v46  ;;  %v2290_v19 = vpop.permute.xlu1 %2289  ;;  %v3375_v56 = vpack.c.bf16 %v2267_v0, %v2265_v34  ;;  %v2449_v34 = vmax.f32 %v2433_v4, 0.0  ;;  %v2437_v31 = vadd.f32 %v2410_v39, %v5216_v15  ;;  %p3784_p3 = scmp.lt.s32.totalorder %s3782_s30, %s3776_s14 }
 0x4f5   : > { %v2312_v49 = vadd.f32 %v2290_v19, %v5236_v51  ;;  %v2313_v7 = vadd.f32 %v2290_v19, %v5238_v47  ;;  %v2448_v19 = vmax.f32 %v2432_v23, 0.0 }
 0x4f6   : > { %3376 = vmatprep.subr.bf16.mxu1 %v3375_v56  ;;  %v3415_v26 = vpack.c.bf16 %v2451_v29, %v2449_v34  ;;  %p3785_p2 = por %p3784_p3, %p3783_p1 }
 0x4f7   : > { %v2328_v13 = vmax.f32 %v2312_v49, 0.0  ;;  %v2329_v60 = vmax.f32 %v2313_v7, 0.0  ;;  %3378 = vmatpush1.bf16.msra.mxu1 %v3377_v40  ;;  %v2436_v49 = vadd.f32 %v2410_v39, %v5214_v24  ;;  %v3417_v48 = vpack.c.bf16 %v2450_v10, %v2448_v19 }
 0x4f8   : > { %p3786_p0 = pnand %p3785_p2, %p3779_p13 }
 0x4f9   : > { %v3393_v2 = vpack.c.bf16 %v2330_v28, %v2328_v13  ;;  %v2238_v43 = vpop.permute.xlu1 %2237  ;;  %v3391_v53 = vpack.c.bf16 %v2331_v63, %v2329_v60  ;;  %v2438_v63 = vadd.f32 %v5234_v9, %v5222_v3  ;;  %v2453_v13 = vmax.f32 %v2437_v31, 0.0 }
 0x4fa   : > { %v2254_v42 = vadd.f32 %v2238_v43, %v5268_v1  ;;  %v2255_v40 = vadd.f32 %v2238_v43, %v5270_v21  ;;  %v2373_v60 = vadd.f32 %v5240_v33, %v5216_v15  ;;  %v2375_v9 = vadd.f32 %v5232_v41, %v5224_v12 }
 0x4fb   : > { %3392 = vmatprep.subr.bf16.mxu0 %v3391_v53  ;;  %v2452_v15 = vmax.f32 %v2436_v49, 0.0  ;;  %v3419_v32 = vpack.c.bf16 %v2455_v62, %v2453_v13  ;;  %v2454_v34 = vmax.f32 %v2438_v63, 0.0  ;;  %v2374_v12 = vadd.f32 %v5232_v41, %v5222_v3 }
 0x4fc   : > { %3394 = vmatpush1.bf16.msra.mxu0 %v3393_v2  ;;  %v2270_v2 = vmax.f32 %v2254_v42, 0.0  ;;  %v2271_v43 = vmax.f32 %v2255_v40, 0.0  ;;  %v2389_v36 = vmax.f32 %v2373_v60, 0.0  ;;  %v2377_v31 = vadd.f32 %v5250_v54, %v5238_v47 }
 0x4fd   : > { %v2390_v45 = vmax.f32 %v2374_v12, 0.0 }
 0x4fe   : > { %v2302_v5 = vpop.permute.xlu1 %2301 }
 0x4ff   : > { %v2318_v25 = vadd.f32 %v2302_v5, %v5268_v1  ;;  %v2319_v46 = vadd.f32 %v2302_v5, %v5270_v21 }
 0x501   : > { %v2334_v0 = vmax.f32 %v2318_v25, 0.0  ;;  %v2335_v52 = vmax.f32 %v2319_v46, 0.0  ;;  %v2372_v25 = vadd.f32 %v5240_v33, %v5214_v24  ;;  %v2422_v46 = vpop.permute.xlu0 %2421  ;;  %v2391_v24 = vmax.f32 %v2375_v9, 0.0 }
 0x502   : > { %v3421_v33 = vpack.c.bf16 %v2454_v34, %v2452_v15 }
 0x503   : > { %v3397_v11 = vpack.c.bf16 %v2334_v0, %v2332_v17  ;;  %v2233_v56 = vpop.permute.xlu1 %2232  ;;  %v3395_v61 = vpack.c.bf16 %v2335_v52, %v2333_v30  ;;  %v3399_v30 = vpack.c.bf16 %v2387_v44, %v2385_v57  ;;  %v2442_v0 = vadd.f32 %v2422_v46, %v5244_v38 }
 0x504   : > { %v2252_v7 = vadd.f32 %v2233_v56, %v5256_v55  ;;  %v2253_v28 = vadd.f32 %v2233_v56, %v5258_v20  ;;  %v2443_v52 = vadd.f32 %v2422_v46, %v5246_v37  ;;  %v2388_v10 = vmax.f32 %v2372_v25, 0.0 }
 0x505   : > { %3396 = vmatprep.subr.bf16.mxu0 %v3395_v61  ;;  %v3403_v19 = vpack.c.bf16 %v2391_v24, %v2389_v36 }
 0x506   : > { %v2268_v53 = vmax.f32 %v2252_v7, 0.0  ;;  %v2269_v4 = vmax.f32 %v2253_v28, 0.0  ;;  %3398 = vmatpush1.bf16.msra.mxu0 %v3397_v11  ;;  %v2393_v11 = vmax.f32 %v2377_v31, 0.0  ;;  %v2459_v56 = vmax.f32 %v2443_v52, 0.0 }
 0x507   : > { %3416 = vmatprep.subr.bf16.mxu0 %v3415_v26 }
 0x508   : > { %v3381_v39 = vpack.c.bf16 %v2270_v2, %v2268_v53  ;;  %v2358_v5 = vpop.permute.xlu1 %2357  ;;  %v3379_v23 = vpack.c.bf16 %v2271_v43, %v2269_v4  ;;  %v2426_v43 = vpop.permute.xlu0 %2425 }
 0x509   : > { %3007 = vmatmul.mubr.msk.f32.vlgmr.msra.gmra.mrb[10].mxu0 %vm2471_vm10, %v5295_v8  ;;  %v2379_v17 = vadd.f32 %v2358_v5, %v5246_v37  ;;  %v2378_v29 = vadd.f32 %v2358_v5, %v5244_v38  ;;  %v2376_v37 = vadd.f32 %v5250_v54, %v5236_v51  ;;  %v2458_v38 = vmax.f32 %v2442_v0, 0.0 }
 0x50a   : > { %3380 = vmatprep.subr.bf16.mxu1 %v3379_v23  ;;  %3418 = vmatpush1.bf16.msra.mxu0 %v3417_v48  ;;  %v2444_v62 = vadd.f32 %v2426_v43, %v5256_v55  ;;  %v2445_v9 = vadd.f32 %v2426_v43, %v5258_v20 }
 0x50b   : > { %3382 = vmatpush1.bf16.msra.mxu1 %v3381_v39  ;;  %3420 = vmatprep.subr.bf16.mxu0 %v3419_v32  ;;  %v2395_v40 = vmax.f32 %v2379_v17, 0.0  ;;  %v2394_v49 = vmax.f32 %v2378_v29, 0.0  ;;  %v2392_v60 = vmax.f32 %v2376_v37, 0.0 }
 0x50c   : > { %3400 = vmatprep.subr.bf16.mxu1 %v3399_v30  ;;  %2752 = vmatprep.mubr.f32.mxu0 %v5458_v6  ;;  %v2460_v46 = vmax.f32 %v2444_v62, 0.0  ;;  %v2461_v32 = vmax.f32 %v2445_v9, 0.0 }
 0x50d   : > { %v2418_v42 = vpop.permute.xlu1 %2417  ;;  %v3407_v63 = vpack.c.bf16 %v2395_v40, %v2393_v11 }
 0x50e   : > { %v2440_v3 = vadd.f32 %v2418_v42, %v5236_v51  ;;  %v2441_v41 = vadd.f32 %v2418_v42, %v5238_v47  ;;  %3006 = vmatmul.mubr.msk.f32.vlgmr.msra.gmra.mrb[16].mxu1 %vm2471_vm10, %v5295_v8  ;;  %3422 = vmatpush1.bf16.msra.mxu0 %v3421_v33  ;;  %v3405_v47 = vpack.c.bf16 %v2390_v45, %v2388_v10 }
 0x50f   : > { %3402 = vmatpush1.bf16.msra.mxu1 %v5210_v18  ;;  %2681 = vmatprep.mubr.f32.mxu1 %v5458_v6  ;;  %v3409_v51 = vpack.c.bf16 %v2394_v49, %v2392_v60 }
 0x510   : > { %v2456_v61 = vmax.f32 %v2440_v3, 0.0  ;;  %v2457_v57 = vmax.f32 %v2441_v41, 0.0  ;;  %3404 = vmatprep.subr.bf16.mxu1 %v3403_v19 }
 0x512   : > { %v3425_v7 = vpack.c.bf16 %v2458_v38, %v2456_v61  ;;  %v2366_v28 = vpop.permute.xlu1 %2365  ;;  %v3423_v13 = vpack.c.bf16 %v2459_v56, %v2457_v57 }
 0x513   : > { %3406 = vmatpush1.bf16.msra.mxu1 %v3405_v47  ;;  %v2382_v18 = vadd.f32 %v2366_v28, %v5268_v1  ;;  %v2383_v6 = vadd.f32 %v2366_v28, %v5270_v21 }
 0x514   : > { %3408 = vmatprep.subr.bf16.mxu1 %v3407_v63  ;;  %3424 = vmatprep.subr.bf16.mxu0 %v3423_v13 }
 0x515   : > { %3426 = vmatpush1.bf16.msra.mxu0 %v3425_v7  ;;  %v2398_v53 = vmax.f32 %v2382_v18, 0.0  ;;  %v2399_v4 = vmax.f32 %v2383_v6, 0.0 }
 0x516   : > { %v2362_v54 = vpop.permute.xlu1 %2361 }
 0x517   : > { %v2380_v26 = vadd.f32 %v2362_v54, %v5256_v55  ;;  %v2381_v2 = vadd.f32 %v2362_v54, %v5258_v20  ;;  %3410 = vmatpush1.bf16.msra.mxu1 %v3409_v51  ;;  %v1757_v55 = vpop.permute.xlu0 %1756 }
 0x518   : > { %v1901_v20 = vadd.f32 %v5178_v58, %v1757_v55  ;;  %v1830_v31 = vadd.f32 %v5149_v16, %v1757_v55  ;;  %v1832_v24 = vadd.f32 %v5151_v14, %v1757_v55  ;;  %v1974_v16 = vadd.f32 %v5155_v22, %v1757_v55 }
 0x519   : > { %v2396_v44 = vmax.f32 %v2380_v26, 0.0  ;;  %v2397_v48 = vmax.f32 %v2381_v2, 0.0  ;;  %v2043_v37 = vadd.f32 %v5182_v50, %v1757_v55  ;;  %v2045_v11 = vadd.f32 %v5184_v59, %v1757_v55 }
 0x51a   : > { %v2759_v52 = vsub.f32 0.0, %v1830_v31  ;;  %v2760_v10 = vsub.f32 0.0, %v1832_v24  ;;  %v2764_v45 = vsub.f32 0.0, %v1974_v16 }
 0x51b   : > { %v3413_v15 = vpack.c.bf16 %v2398_v53, %v2396_v44  ;;  %v2430_v39 = vpop.permute.xlu1 %2429  ;;  %v3411_v5 = vpack.c.bf16 %v2399_v4, %v2397_v48  ;;  %v2765_v47 = vsub.f32 0.0, %v2043_v37  ;;  %v2766_v49 = vsub.f32 0.0, %v2045_v11 }
 0x51c   : > { %v2446_v23 = vadd.f32 %v2430_v39, %v5268_v1  ;;  %v2447_v25 = vadd.f32 %v2430_v39, %v5270_v21  ;;  %v1903_v1 = vadd.f32 %v5180_v27, %v1757_v55  ;;  %v2761_v21 = vsub.f32 0.0, %v1901_v20 }
 0x51d   : > { %3412 = vmatprep.subr.bf16.mxu1 %v3411_v5  ;;  %v2767_v29 = vmul.f32 1.442695, %v2759_v52  ;;  %v2769_v42 = vmul.f32 1.442695, %v2760_v10  ;;  %v1972_v27 = vadd.f32 %v5153_v35, %v1757_v55  ;;  %v2777_v57 = vmul.f32 1.442695, %v2764_v45 }
 0x51e   : > { %v2462_v34 = vmax.f32 %v2446_v23, 0.0  ;;  %v2463_v36 = vmax.f32 %v2447_v25, 0.0  ;;  %3414 = vmatpush1.bf16.msra.mxu1 %v3413_v15  ;;  %v2762_v12 = vsub.f32 0.0, %v1903_v1  ;;  %v2771_v33 = vmul.f32 1.442695, %v2761_v21 }
 0x51f   : > { %v2763_v19 = vsub.f32 0.0, %v1972_v27  ;;  %v2779_v22 = vmul.f32 1.442695, %v2765_v47  ;;  %v2781_v13 = vmul.f32 1.442695, %v2766_v49 }
 0x520   : > { %v3429_v17 = vpack.c.bf16 %v2462_v34, %v2460_v46  ;;  %v3427_v30 = vpack.c.bf16 %v2463_v36, %v2461_v32  ;;  %v2773_v0 = vmul.f32 1.442695, %v2762_v12  ;;  %3573 = vpow2.f32 %v2771_v33  ;;  %v2469_v7 = vpop.permute.xlu1 %2468 }
 0x521   : > { %3008 = vmatmul.mubr.msk.f32.vlgmr.msra.gmra.mrb[18].mxu1 %vm2471_vm10, %v5295_v8  ;;  %v2775_v61 = vmul.f32 1.442695, %v2763_v19 }
 0x522   : > { %3428 = vmatprep.subr.bf16.mxu0 %v3427_v30  ;;  %3575 = vpow2.f32 %v2773_v0 }
 0x523   : > { %3430 = vmatpush1.bf16.msra.mxu0 %v3429_v17  ;;  %3577 = vpow2.f32 %v2767_v29 }
 0x524   : > { %3579 = vpow2.f32 %v2769_v42 }
 0x526   : > { %3009 = vmatmul.mubr.msk.f32.vlgmr.msra.gmra.mrb[12].mxu0 %vm2471_vm10, %v5295_v8 }
 0x52a   : > { %v3574_v8 = vpop.eup %3573 }
 0x52b   : > { %v2785_v40 = vadd.f32 1.0, %v3574_v8 }
 0x52c   : > { %v3576_v58 = vpop.eup %3575 }
 0x52d   : > { %v2786_v3 = vadd.f32 1.0, %v3576_v58  ;;  %v3578_v41 = vpop.eup %3577  ;;  %3581 = vrcp.f32 %v2785_v40 }
 0x52e   : > { %v3580_v14 = vpop.eup %3579  ;;  %v2783_v38 = vadd.f32 1.0, %v3578_v41 }
 0x52f   : > { %3583 = vrcp.f32 %v2786_v3  ;;  %v2784_v56 = vadd.f32 1.0, %v3580_v14 }
 0x530   : > { %3585 = vrcp.f32 %v2783_v38 }
 0x531   : > { %3587 = vrcp.f32 %v2784_v56 }
 0x532   : > { %3589 = vpow2.f32 %v2775_v61 }
 0x533   : > { %3591 = vpow2.f32 %v2777_v57 }
 0x534   : > { %3593 = vpow2.f32 %v2779_v22 }
 0x535   : > { %3595 = vpow2.f32 %v2781_v13 }
 0x537   : > { %v3582_v35 = vpop.eup %3581 }
 0x539   : > { %v3584_v63 = vpop.eup %3583 }
 0x53a   : > { %v3586_v43 = vpop.eup %3585 }
 0x53b   : > { %v3588_v4 = vpop.eup %3587 }
 0x53c   : > { %v3590_v48 = vpop.eup %3589 }
 0x53d   : > { %v3592_v9 = vpop.eup %3591  ;;  %v2787_v39 = vadd.f32 1.0, %v3590_v48 }
 0x53e   : > { %v2788_v5 = vadd.f32 1.0, %v3592_v9  ;;  %v3594_v23 = vpop.eup %3593 }
 0x53f   : > { %v3596_v25 = vpop.eup %3595  ;;  %3597 = vrcp.f32 %v2787_v39  ;;  %v2789_v46 = vadd.f32 1.0, %v3594_v23 }
 0x540   : > { %3599 = vrcp.f32 %v2788_v5  ;;  %v2790_v32 = vadd.f32 1.0, %v3596_v25 }
 0x541   : > { %3601 = vrcp.f32 %v2789_v46 }
 0x542   : > { %3603 = vrcp.f32 %v2790_v32 }
 0x549   : > { %v3598_v30 = vpop.eup %3597 }
 0x54a   : > { %v3600_v20 = vpop.eup %3599 }
 0x54b   : > { %v3602_v0 = vpop.eup %3601 }
 0x54c   : > { %v3604_v10 = vpop.eup %3603 }
 0x5dc   : > { %v2612_v28 = vpop.f32.mrb[10].mxu0 }
 0x5dd   : > { %v2613_v50 = vadd.f32 %v2612_v28, %v2469_v7  ;;  %v2614_v60 = vpop.f32.mrb[11].mxu0 }
 0x5de   : > { %v2615_v59 = vadd.f32 %v2614_v60, %v2469_v7 }
 0x5df   : > { %v2801_v51 = vadd.f32 %v3582_v35, %v2613_v50 }
 0x5e0   : > { %v2802_v18 = vadd.f32 %v3584_v63, %v2615_v59 }
 0x5e1   : > { %v2541_v6 = vpop.f32.mrb[16].mxu1 }
 0x5e2   : > { %v2542_v54 = vadd.f32 %v2541_v6, %v2469_v7  ;;  %v2543_v26 = vpop.f32.mrb[17].mxu1  ;;  %v2816_v2 = vcombine.low %v2801_v51, %v2802_v18 }
 0x5e3   : > { %v2544_v53 = vadd.f32 %v2543_v26, %v2469_v7 }
 0x5e4   : > { %v2799_v44 = vadd.f32 %v3586_v43, %v2542_v54  ;;  %2824 = vst [vmem:[%s5341_s19 + $0x8] sm:$0xff] %v2816_v2 }
 0x5e5   : > { %v2800_v62 = vadd.f32 %v3588_v4, %v2544_v53 }
 0x5e7   : > { %v2815_v15 = vcombine.low %v2799_v44, %v2800_v62 }
 0x5e9   : > { %2823 = vst [vmem:[%s5341_s19] sm:$0xff] %v2815_v15 }
 0x5f4   : > { %v2683_v34 = vpop.f32.mrb[18].mxu1 }
 0x5f5   : > { %v2684_v36 = vadd.f32 %v2683_v34, %v2469_v7  ;;  %v2685_v17 = vpop.f32.mrb[19].mxu1 }
 0x5f6   : > { %v2686_v55 = vadd.f32 %v2685_v17, %v2469_v7 }
 0x5f7   : > { %v2803_v1 = vadd.f32 %v3598_v30, %v2684_v36 }
 0x5f8   : > { %v2804_v21 = vadd.f32 %v3600_v20, %v2686_v55 }
 0x5f9   : > { %v2754_v12 = vpop.f32.mrb[12].mxu0 }
 0x5fa   : > { %v2817_v31 = vcombine.low %v2803_v1, %v2804_v21  ;;  %v2755_v24 = vadd.f32 %v2754_v12, %v2469_v7  ;;  %v2756_v33 = vpop.f32.mrb[13].mxu0 }
 0x5fb   : > { %v2757_v52 = vadd.f32 %v2756_v33, %v2469_v7 }
 0x5fc   : > { %2825 = vst [vmem:[%s5341_s19 + $0x10] sm:$0xff] %v2817_v31  ;;  %v2805_v29 = vadd.f32 %v3602_v0, %v2755_v24 }
 0x5fd   : > { %v2806_v42 = vadd.f32 %v3604_v10, %v2757_v52 }
 0x5ff   : > { %v2818_v8 = vcombine.low %v2805_v29, %v2806_v42 }
 0x601   : > { %2826 = vst [vmem:[%s5341_s19 + $0x18] sm:$0xff] %v2818_v8 }
 0x602   : > { %3789 = shalt.err (!%p3786_p0)
}
 0x603   : > { %s3790_s17 = scalar_lea.hbm %s5351_s13, 512  ;;  %s3794_s20 = scalar_lea.hbm %s5472_s11, 1024 }
 0x604   : > { %p3791_p6 = scmp.ne.s32.totalorder %s5351_s13, %s3790_s17  ;;  %p3795_p8 = scmp.lt.u32.totalorder %s5351_s13, %s5472_s11 }
 0x605   : > { %p3796_p5 = scmp.lt.u32.totalorder %s3794_s20, %s3790_s17  ;;  %p3798_p7 = scmp.lt.u32.totalorder %s3790_s17, %s5351_s13 }
 0x606   : > { %p3792_p10 = pnand %p3791_p6, %p5473_p4 }
 0x607   : > { %p3797_p9 = por %p3796_p5, %p3795_p8 }
 0x608   : > { %p3793_p11 = pneg %p3792_p10 }
 0x609   : > { %p3799_p12 = por %p3798_p7, %p3797_p9 }
 0x60b   : > { %p3800_p13 = pnand %p3799_p12, %p3793_p11 }
 0x60d   : > { %3803 = shalt.err (!%p3800_p13)
}
 0x60e   : > { %3453 = dma.vmem_to_hbm [thread:$0]  (%p5473_p4), %s5353_s28, 512, %s5351_s13, %s2828_s16  }
 0x60f PF: > { %s2854_s14 = sand.u32 1, %s3842_s21   ;;  %p5474_p1 = scmp.ne.s32.totalorder %s5438_s29, 0 }
 0x610   : > { %p5475_p3 = scmp.ge.s32.totalorder %s3854_s24, 2  ;;  %s2855_s27 = scalar_lea.sflag [#allocation5], %s2854_s14 }
 0x612   : > { %p3476_p2 = pnand %p5475_p3, %p5474_p1 }
 0x614   : > { %3837 = dma.done.wait (!%p3476_p2), %s2855_s27, 512  }
 0x615   : > { %3839 = vsyncadd (!%p3476_p2), %s2855_s27, 4294966784  ;;  %p28_p0 = scmp.ge.s32.totalorder %s4110_s25, 4   ;;  %s5476_s21 = smov %s3846_s22 }
 0x616   : > { %s5477_s22 = smov %s3850_s23  ;;  %s5478_s23 = smov %s4122_s12 }
 0x617   : > { %s5479_s24 = smov %s4110_s25  ;;  %30 = sbr.rel (!%p28_p0) target bundleno = 13 (0xd), region = 140 }
 0x61e   :  { %2860 = vsyncpa [#allocation4], 1 }
 0x61f   :  { %2862 = vsyncpa [#allocation4 + $0x1], 1 }
 0x620   :  { %2863 = vsyncpa [#allocation7], 1 }
 0x621   :  { %2864 = vsyncpa [#allocation10], 1 }
 0x622   :  { %2865 = vsyncpa [#allocation13], 1 }
 0x623   :  { %2866 = vsyncpa [#allocation5], 1 }
 0x624   :  { %2868 = vsyncpa [#allocation5 + $0x1], 1 }

</bundles_post_ra>
